<compile_context>
chip_gen: v7x
topology: tpu7x:2x2x1
jax: 0.10.0
libtpu: 0.0.40
codegen_flags: <defaults>
</compile_context>

<pallas_src>
import jax
import jax.numpy as jnp
from jax import lax
from jax.experimental import pallas as pl
from jax.experimental.pallas import tpu as pltpu


_VMEM_SPEC = pl.BlockSpec(memory_space=pltpu.MemorySpace.VMEM)


# ----------------------------- Pallas kernel --------------------------------

def make_fused_lstm_kernel(num_layers, T, Bp, H, matmul_dtype):
    """Fused kernel: L LSTM layers (wavefronted) + ReLU + FC head.

    Ref order (inputs..., outputs...):
      x2d[T*Bp, Din0], w_ih0[Din0, 4H], b0[1, 4H],
      w_rec[l] ([H, 8H] = W_hh_l | W_ih_{l+1}, or [H, 4H] for the last layer)
                               for l = 0..L-1,
      b[l][1, 4H]              for l = 1..L-1,
      w_fc[H, O], b_fc[1, O],
      out[Bp, O]
    """
    L = num_layers
    FH = 4 * H
    f32 = jnp.float32

    def kernel(*refs):
        x_ref = refs[0]
        wih0_ref = refs[1]
        b0_ref = refs[2]
        wrec_refs = [refs[3 + l] for l in range(L)]
        b_refs = [refs[3 + L + l] for l in range(L - 1)]   # biases, layers 1..L-1
        wfc_ref = refs[2 + 2 * L]
        bfc_ref = refs[3 + 2 * L]
        out_ref = refs[4 + 2 * L]

        def cast(v):
            return v if v.dtype == matmul_dtype else v.astype(matmul_dtype)

        # Hoisted layer-0 input projection (bias folded): one lane-dense
        # [T*Bp, 4H] matmul; per-step slices below are static & sublane-aligned,
        # so gx0 never round-trips through a scratch ref.
        gx0 = jnp.dot(x_ref[...], wih0_ref[...],
                      preferred_element_type=f32) + b0_ref[...]

        wrec = [r[...] for r in wrec_refs]      # loaded once
        brest = [r[...] for r in b_refs]

        h = [jnp.zeros((Bp, H), f32) for _ in range(L)]
        c = [jnp.zeros((Bp, H), f32) for _ in range(L)]

        # Wavefront: at step s, layer l processes time t = s - l.  Every matmul
        # consumes h from the PREVIOUS wavefront step, so per-layer work within
        # one step is mutually independent (cross-layer MXU/VPU overlap).
        for s in range(T + L - 1):
            m = [None] * L
            for l in range(L):
                own = (0 <= s - l < T) and (s - l > 0)          # own recurrence
                feed = (l + 1 < L) and (0 <= s - (l + 1) < T)   # feeds layer l+1
                if own or feed:
                    # [Bp, H] x [H, 8H (4H for the last layer)]
                    m[l] = jnp.dot(cast(h[l]), wrec[l],
                                   preferred_element_type=f32)

            new_h = list(h)
            new_c = list(c)
            for l in range(L):
                t = s - l
                if not (0 <= t < T):
                    continue
                if l == 0:
                    gates = gx0[t * Bp:(t + 1) * Bp, :]
                else:
                    gates = m[l - 1][:, FH:2 * FH] + brest[l - 1]
                if t > 0:
                    gates = gates + m[l][:, :FH]
                # sigmoid(x) = 0.5*tanh(0.5*x)+0.5 over the full lane-dense row;
                # g-gate pre-activations were pre-scaled by 2 at pack time, so
                # tanh(g) == 2*sig_g - 1 (no second full-row tanh).
                sig = 0.5 * jnp.tanh(0.5 * gates) + 0.5
                i_g = sig[:, 0 * H:1 * H]
                f_g = sig[:, 1 * H:2 * H]
                g_g = 2.0 * sig[:, 2 * H:3 * H] - 1.0
                o_g = sig[:, 3 * H:4 * H]
                c_new = f_g * c[l] + i_g * g_g
                new_c[l] = c_new
                new_h[l] = o_g * jnp.tanh(c_new)
            h, c = new_h, new_c

        # ReLU + FC head fused: only [Bp, O] ever leaves VMEM.
        h_relu = jnp.maximum(h[L - 1], 0.0)
        out_ref[...] = (jnp.dot(cast(h_relu), wfc_ref[...],
                                preferred_element_type=f32) + bfc_ref[...])

    return kernel


# --------------------- one-time param packing (hoisted) ----------------------

def pack_params(params, matmul_dtype=jnp.float32):
    """One-time conversion of PyTorch-layout params to kernel layout.

    - transposes weights to [in, out],
    - folds b_ih + b_hh,
    - pre-scales the g-gate rows by 2 (single-tanh gate trick),
    - packs W_hh[l] | W_ih[l+1] into one [H, 8H] recurrent matrix,
    - optionally casts matmul operands to bf16 (v6e/v7x MXU); biases stay f32.
    """
    layers = params["layers"]
    L = len(layers)
    H = layers[0]["w_hh"].shape[1]
    gscale = jnp.concatenate([jnp.ones((2 * H,), jnp.float32),
                              jnp.full((H,), 2.0, jnp.float32),
                              jnp.ones((H,), jnp.float32)])

    def wt(w):  # [4H, Din] -> [Din, 4H], g rows pre-scaled
        return (w.astype(jnp.float32) * gscale[:, None]).T.astype(matmul_dtype)

    def bias(layer):
        return ((layer["b_ih"] + layer["b_hh"]).astype(jnp.float32)
                * gscale)[None, :]

    whh_t = [wt(l["w_hh"]) for l in layers]                      # [H, 4H]
    wrec = []
    for l in range(L):
        if l < L - 1:
            wrec.append(jnp.concatenate(
                [whh_t[l], wt(layers[l + 1]["w_ih"])], axis=1))  # [H, 8H]
        else:
            wrec.append(whh_t[l])                                # [H, 4H]

    return {
        "wih0": wt(layers[0]["w_ih"]),                           # [Din, 4H]
        "b0": bias(layers[0]),                                   # [1, 4H]
        "wrec": wrec,
        "brest": [bias(layers[l]) for l in range(1, L)],         # [1, 4H] each
        "wfc": jnp.transpose(params["fc_w"]).astype(jnp.float32)
                   .astype(matmul_dtype),                        # [H, O]
        "bfc": params["fc_b"].astype(jnp.float32)[None, :],      # [1, O]
    }


# ------------------------------ JAX wrapper ----------------------------------

def lstm_backbone_forward(packed, x):
    """Mirrors LSTMBackBone.forward. x: [B, T, D] or [B, D] (treated as T=1)."""
    if x.ndim == 2:
        x = x[:, None, :]
    B, T, D = x.shape
    Bp = max(8, ((B + 7) // 8) * 8)          # pad batch to the f32 sublane tile

    wrec = packed["wrec"]
    L = len(wrec)
    H = wrec[-1].shape[0]
    O = packed["wfc"].shape[1]
    mdt = packed["wih0"].dtype

    # [B,T,D] -> time-major, batch-padded, flattened 2-D slab [T*Bp, D] so the
    # hoisted projection input is contiguous and needs no in-kernel reshape.
    seq = jnp.transpose(x, (1, 0, 2)).astype(jnp.float32)
    seq = jnp.pad(seq, ((0, 0), (0, Bp - B), (0, 0)))
    seq = seq.reshape(T * Bp, D).astype(mdt)

    args = [seq, packed["wih0"], packed["b0"], *wrec, *packed["brest"],
            packed["wfc"], packed["bfc"]]

    # VMEM budget from actual resident bytes (+ gx0 value + out + headroom).
    nbytes = sum(int(a.size) * a.dtype.itemsize for a in args)
    nbytes += T * Bp * 4 * H * 4 + Bp * O * 4
    vmem_limit = int(min(96 * 2 ** 20, max(16 * 2 ** 20, 2 * nbytes)))

    kernel = make_fused_lstm_kernel(L, T, Bp, H, mdt)
    out = pl.pallas_call(
        kernel,
        out_shape=jax.ShapeDtypeStruct((Bp, O), jnp.float32),
        in_specs=[_VMEM_SPEC] * len(args),
        out_specs=_VMEM_SPEC,
        compiler_params=pltpu.CompilerParams(vmem_limit_bytes=vmem_limit),
    )(*args)
    return out[:B]


# ----------------------- parameter init (PyTorch-like) ----------------------

def init_params(key, input_dim, hidden_dim, layer_dim, output_dim):
    bound = 1.0 / (hidden_dim ** 0.5)

    def unif(k, shape):
        return jax.random.uniform(k, shape, jnp.float32, -bound, bound)

    params = {"layers": []}
    for l in range(layer_dim):
        din = input_dim if l == 0 else hidden_dim
        key, k1, k2, k3, k4 = jax.random.split(key, 5)
        params["layers"].append({
            "w_ih": unif(k1, (4 * hidden_dim, din)),       # [4H, Din]  (i,f,g,o)
            "w_hh": unif(k2, (4 * hidden_dim, hidden_dim)),
            "b_ih": unif(k3, (4 * hidden_dim,)),
            "b_hh": unif(k4, (4 * hidden_dim,)),
        })
    key, k1, k2 = jax.random.split(key, 3)
    params["fc_w"] = unif(k1, (output_dim, hidden_dim))    # [O, H]
    params["fc_b"] = unif(k2, (output_dim,))
    return params


# ---------------------------- pure-JAX reference ----------------------------

def reference_forward(params, x):
    if x.ndim == 2:
        x = x[:, None, :]
    seq = jnp.transpose(x, (1, 0, 2)).astype(jnp.float32)  # [T, B, D]
    for layer in params["layers"]:
        wih_t = jnp.transpose(layer["w_ih"])
        whh_t = jnp.transpose(layer["w_hh"])
        b = layer["b_ih"] + layer["b_hh"]
        H = layer["w_hh"].shape[1]
        B = seq.shape[1]

        def step(carry, x_t):
            h, c = carry
            gates = x_t @ wih_t + h @ whh_t + b
            i = jax.nn.sigmoid(gates[:, 0 * H:1 * H])
            f = jax.nn.sigmoid(gates[:, 1 * H:2 * H])
            g = jnp.tanh(gates[:, 2 * H:3 * H])
            o = jax.nn.sigmoid(gates[:, 3 * H:4 * H])
            c_new = f * c + i * g
            h_new = o * jnp.tanh(c_new)
            return (h_new, c_new), h_new

        init = (jnp.zeros((B, H), jnp.float32), jnp.zeros((B, H), jnp.float32))
        _, seq = lax.scan(step, init, seq)
    h_last = seq[-1]
    return jnp.maximum(h_last, 0.0) @ params["fc_w"].T + params["fc_b"]


# --------------------------------- main --------------------------------------

if __name__ == "__main__":
    input_dim, hidden_dim, layer_dim, output_dim = 8, 32, 2, 4
    batch, seq_len = 2, 8

    key = jax.random.PRNGKey(0)
    key, pkey, xkey = jax.random.split(key, 3)
    params = init_params(pkey, input_dim, hidden_dim, layer_dim, output_dim)
    x = jax.random.normal(xkey, (batch, seq_len, input_dim), jnp.float32)

    # Transposes / g-scaling / packing done ONCE, outside the forward path.
    # (On v6e/v7x, pass matmul_dtype=jnp.bfloat16 for ~2x MXU/BW.)
    packed = pack_params(params)

    fwd = jax.jit(lstm_backbone_forward)
    out = jax.block_until_ready(fwd(packed, x))

    ref = reference_forward(params, x)
    assert out.shape == (batch, output_dim)
    assert jnp.allclose(out, ref, atol=1e-4, rtol=1e-4), (out, ref)

    print("KERNEL_OK")
</pallas_src>

<mosaic_0001>
module attributes {stable_mosaic.version = 11 : i64} {
  func.func @kernel(%arg0: memref<64x8xf32, #tpu.memory_space<vmem>>, %arg1: memref<8x128xf32, #tpu.memory_space<vmem>>, %arg2: memref<1x128xf32, #tpu.memory_space<vmem>>, %arg3: memref<32x256xf32, #tpu.memory_space<vmem>>, %arg4: memref<32x128xf32, #tpu.memory_space<vmem>>, %arg5: memref<1x128xf32, #tpu.memory_space<vmem>>, %arg6: memref<32x4xf32, #tpu.memory_space<vmem>>, %arg7: memref<1x4xf32, #tpu.memory_space<vmem>>, %arg8: memref<8x4xf32, #tpu.memory_space<vmem>>) attributes {dimension_semantics = [], scalar_prefetch = 0 : i64, scratch_operands = 0 : i64, tpu.core_type = #tpu.core_type<tc>} {
    %c0 = arith.constant 0 : index
    %c0_0 = arith.constant 0 : index
    %0 = vector.load %arg0[%c0, %c0_0] : memref<64x8xf32, #tpu.memory_space<vmem>>, vector<64x8xf32>
    %c0_1 = arith.constant 0 : index
    %c0_2 = arith.constant 0 : index
    %1 = vector.load %arg1[%c0_1, %c0_2] : memref<8x128xf32, #tpu.memory_space<vmem>>, vector<8x128xf32>
    %cst = arith.constant dense<0.000000e+00> : vector<64x128xf32>
    %2 = tpu.matmul %0, %1, %cst {dimension_numbers = #tpu.dot_dimension_numbers<[1], [0], [0], [1], [0, 0, 1, 1], [], []>} : vector<64x8xf32>, vector<8x128xf32>, vector<64x128xf32> -> vector<64x128xf32>
    %c0_3 = arith.constant 0 : index
    %c0_4 = arith.constant 0 : index
    %3 = vector.load %arg2[%c0_3, %c0_4] : memref<1x128xf32, #tpu.memory_space<vmem>>, vector<1x128xf32>
    %4 = vector.broadcast %3 : vector<1x128xf32> to vector<64x128xf32>
    %5 = arith.addf %2, %4 : vector<64x128xf32>
    %c0_5 = arith.constant 0 : index
    %c0_6 = arith.constant 0 : index
    %6 = vector.load %arg3[%c0_5, %c0_6] : memref<32x256xf32, #tpu.memory_space<vmem>>, vector<32x256xf32>
    %c0_7 = arith.constant 0 : index
    %c0_8 = arith.constant 0 : index
    %7 = vector.load %arg4[%c0_7, %c0_8] : memref<32x128xf32, #tpu.memory_space<vmem>>, vector<32x128xf32>
    %c0_9 = arith.constant 0 : index
    %c0_10 = arith.constant 0 : index
    %8 = vector.load %arg5[%c0_9, %c0_10] : memref<1x128xf32, #tpu.memory_space<vmem>>, vector<1x128xf32>
    %cst_11 = arith.constant 0.000000e+00 : f32
    %9 = vector.broadcast %cst_11 : f32 to vector<8x32xf32>
    %cst_12 = arith.constant 0.000000e+00 : f32
    %10 = vector.broadcast %cst_12 : f32 to vector<8x32xf32>
    %11 = vector.extract_strided_slice %5 {offsets = [0, 0], sizes = [8, 128], strides = [1, 1]} : vector<64x128xf32> to vector<8x128xf32>
    %cst_13 = arith.constant 5.000000e-01 : f32
    %12 = vector.broadcast %cst_13 : f32 to vector<8x128xf32>
    %13 = arith.mulf %12, %11 : vector<8x128xf32>
    %14 = math.tanh %13 : vector<8x128xf32>
    %cst_14 = arith.constant 5.000000e-01 : f32
    %15 = vector.broadcast %cst_14 : f32 to vector<8x128xf32>
    %16 = arith.mulf %15, %14 : vector<8x128xf32>
    %cst_15 = arith.constant 5.000000e-01 : f32
    %17 = vector.broadcast %cst_15 : f32 to vector<8x128xf32>
    %18 = arith.addf %16, %17 : vector<8x128xf32>
    %19 = vector.extract_strided_slice %18 {offsets = [0, 0], sizes = [8, 32], strides = [1, 1]} : vector<8x128xf32> to vector<8x32xf32>
    %20 = vector.extract_strided_slice %18 {offsets = [0, 32], sizes = [8, 32], strides = [1, 1]} : vector<8x128xf32> to vector<8x32xf32>
    %21 = vector.extract_strided_slice %18 {offsets = [0, 64], sizes = [8, 32], strides = [1, 1]} : vector<8x128xf32> to vector<8x32xf32>
    %cst_16 = arith.constant 2.000000e+00 : f32
    %22 = vector.broadcast %cst_16 : f32 to vector<8x32xf32>
    %23 = arith.mulf %22, %21 : vector<8x32xf32>
    %cst_17 = arith.constant 1.000000e+00 : f32
    %24 = vector.broadcast %cst_17 : f32 to vector<8x32xf32>
    %25 = arith.subf %23, %24 : vector<8x32xf32>
    %26 = vector.extract_strided_slice %18 {offsets = [0, 96], sizes = [8, 32], strides = [1, 1]} : vector<8x128xf32> to vector<8x32xf32>
    %27 = arith.mulf %20, %9 : vector<8x32xf32>
    %28 = arith.mulf %19, %25 : vector<8x32xf32>
    %29 = arith.addf %27, %28 : vector<8x32xf32>
    %30 = math.tanh %29 : vector<8x32xf32>
    %31 = arith.mulf %26, %30 : vector<8x32xf32>
    %cst_18 = arith.constant dense<0.000000e+00> : vector<8x256xf32>
    %32 = tpu.matmul %31, %6, %cst_18 {dimension_numbers = #tpu.dot_dimension_numbers<[1], [0], [0], [1], [0, 0, 1, 1], [], []>} : vector<8x32xf32>, vector<32x256xf32>, vector<8x256xf32> -> vector<8x256xf32>
    %33 = vector.extract_strided_slice %5 {offsets = [8, 0], sizes = [8, 128], strides = [1, 1]} : vector<64x128xf32> to vector<8x128xf32>
    %34 = vector.extract_strided_slice %32 {offsets = [0, 0], sizes = [8, 128], strides = [1, 1]} : vector<8x256xf32> to vector<8x128xf32>
    %35 = arith.addf %33, %34 : vector<8x128xf32>
    %cst_19 = arith.constant 5.000000e-01 : f32
    %36 = vector.broadcast %cst_19 : f32 to vector<8x128xf32>
    %37 = arith.mulf %36, %35 : vector<8x128xf32>
    %38 = math.tanh %37 : vector<8x128xf32>
    %cst_20 = arith.constant 5.000000e-01 : f32
    %39 = vector.broadcast %cst_20 : f32 to vector<8x128xf32>
    %40 = arith.mulf %39, %38 : vector<8x128xf32>
    %cst_21 = arith.constant 5.000000e-01 : f32
    %41 = vector.broadcast %cst_21 : f32 to vector<8x128xf32>
    %42 = arith.addf %40, %41 : vector<8x128xf32>
    %43 = vector.extract_strided_slice %42 {offsets = [0, 0], sizes = [8, 32], strides = [1, 1]} : vector<8x128xf32> to vector<8x32xf32>
    %44 = vector.extract_strided_slice %42 {offsets = [0, 32], sizes = [8, 32], strides = [1, 1]} : vector<8x128xf32> to vector<8x32xf32>
    %45 = vector.extract_strided_slice %42 {offsets = [0, 64], sizes = [8, 32], strides = [1, 1]} : vector<8x128xf32> to vector<8x32xf32>
    %cst_22 = arith.constant 2.000000e+00 : f32
    %46 = vector.broadcast %cst_22 : f32 to vector<8x32xf32>
    %47 = arith.mulf %46, %45 : vector<8x32xf32>
    %cst_23 = arith.constant 1.000000e+00 : f32
    %48 = vector.broadcast %cst_23 : f32 to vector<8x32xf32>
    %49 = arith.subf %47, %48 : vector<8x32xf32>
    %50 = vector.extract_strided_slice %42 {offsets = [0, 96], sizes = [8, 32], strides = [1, 1]} : vector<8x128xf32> to vector<8x32xf32>
    %51 = arith.mulf %44, %29 : vector<8x32xf32>
    %52 = arith.mulf %43, %49 : vector<8x32xf32>
    %53 = arith.addf %51, %52 : vector<8x32xf32>
    %54 = math.tanh %53 : vector<8x32xf32>
    %55 = arith.mulf %50, %54 : vector<8x32xf32>
    %56 = vector.extract_strided_slice %32 {offsets = [0, 128], sizes = [8, 128], strides = [1, 1]} : vector<8x256xf32> to vector<8x128xf32>
    %57 = vector.broadcast %8 : vector<1x128xf32> to vector<8x128xf32>
    %58 = arith.addf %56, %57 : vector<8x128xf32>
    %cst_24 = arith.constant 5.000000e-01 : f32
    %59 = vector.broadcast %cst_24 : f32 to vector<8x128xf32>
    %60 = arith.mulf %59, %58 : vector<8x128xf32>
    %61 = math.tanh %60 : vector<8x128xf32>
    %cst_25 = arith.constant 5.000000e-01 : f32
    %62 = vector.broadcast %cst_25 : f32 to vector<8x128xf32>
    %63 = arith.mulf %62, %61 : vector<8x128xf32>
    %cst_26 = arith.constant 5.000000e-01 : f32
    %64 = vector.broadcast %cst_26 : f32 to vector<8x128xf32>
    %65 = arith.addf %63, %64 : vector<8x128xf32>
    %66 = vector.extract_strided_slice %65 {offsets = [0, 0], sizes = [8, 32], strides = [1, 1]} : vector<8x128xf32> to vector<8x32xf32>
    %67 = vector.extract_strided_slice %65 {offsets = [0, 32], sizes = [8, 32], strides = [1, 1]} : vector<8x128xf32> to vector<8x32xf32>
    %68 = vector.extract_strided_slice %65 {offsets = [0, 64], sizes = [8, 32], strides = [1, 1]} : vector<8x128xf32> to vector<8x32xf32>
    %cst_27 = arith.constant 2.000000e+00 : f32
    %69 = vector.broadcast %cst_27 : f32 to vector<8x32xf32>
    %70 = arith.mulf %69, %68 : vector<8x32xf32>
    %cst_28 = arith.constant 1.000000e+00 : f32
    %71 = vector.broadcast %cst_28 : f32 to vector<8x32xf32>
    %72 = arith.subf %70, %71 : vector<8x32xf32>
    %73 = vector.extract_strided_slice %65 {offsets = [0, 96], sizes = [8, 32], strides = [1, 1]} : vector<8x128xf32> to vector<8x32xf32>
    %74 = arith.mulf %67, %10 : vector<8x32xf32>
    %75 = arith.mulf %66, %72 : vector<8x32xf32>
    %76 = arith.addf %74, %75 : vector<8x32xf32>
    %77 = math.tanh %76 : vector<8x32xf32>
    %78 = arith.mulf %73, %77 : vector<8x32xf32>
    %cst_29 = arith.constant dense<0.000000e+00> : vector<8x256xf32>
    %79 = tpu.matmul %55, %6, %cst_29 {dimension_numbers = #tpu.dot_dimension_numbers<[1], [0], [0], [1], [0, 0, 1, 1], [], []>} : vector<8x32xf32>, vector<32x256xf32>, vector<8x256xf32> -> vector<8x256xf32>
    %cst_30 = arith.constant dense<0.000000e+00> : vector<8x128xf32>
    %80 = tpu.matmul %78, %7, %cst_30 {dimension_numbers = #tpu.dot_dimension_numbers<[1], [0], [0], [1], [0, 0, 1, 1], [], []>} : vector<8x32xf32>, vector<32x128xf32>, vector<8x128xf32> -> vector<8x128xf32>
    %81 = vector.extract_strided_slice %5 {offsets = [16, 0], sizes = [8, 128], strides = [1, 1]} : vector<64x128xf32> to vector<8x128xf32>
    %82 = vector.extract_strided_slice %79 {offsets = [0, 0], sizes = [8, 128], strides = [1, 1]} : vector<8x256xf32> to vector<8x128xf32>
    %83 = arith.addf %81, %82 : vector<8x128xf32>
    %cst_31 = arith.constant 5.000000e-01 : f32
    %84 = vector.broadcast %cst_31 : f32 to vector<8x128xf32>
    %85 = arith.mulf %84, %83 : vector<8x128xf32>
    %86 = math.tanh %85 : vector<8x128xf32>
    %cst_32 = arith.constant 5.000000e-01 : f32
    %87 = vector.broadcast %cst_32 : f32 to vector<8x128xf32>
    %88 = arith.mulf %87, %86 : vector<8x128xf32>
    %cst_33 = arith.constant 5.000000e-01 : f32
    %89 = vector.broadcast %cst_33 : f32 to vector<8x128xf32>
    %90 = arith.addf %88, %89 : vector<8x128xf32>
    %91 = vector.extract_strided_slice %90 {offsets = [0, 0], sizes = [8, 32], strides = [1, 1]} : vector<8x128xf32> to vector<8x32xf32>
    %92 = vector.extract_strided_slice %90 {offsets = [0, 32], sizes = [8, 32], strides = [1, 1]} : vector<8x128xf32> to vector<8x32xf32>
    %93 = vector.extract_strided_slice %90 {offsets = [0, 64], sizes = [8, 32], strides = [1, 1]} : vector<8x128xf32> to vector<8x32xf32>
    %cst_34 = arith.constant 2.000000e+00 : f32
    %94 = vector.broadcast %cst_34 : f32 to vector<8x32xf32>
    %95 = arith.mulf %94, %93 : vector<8x32xf32>
    %cst_35 = arith.constant 1.000000e+00 : f32
    %96 = vector.broadcast %cst_35 : f32 to vector<8x32xf32>
    %97 = arith.subf %95, %96 : vector<8x32xf32>
    %98 = vector.extract_strided_slice %90 {offsets = [0, 96], sizes = [8, 32], strides = [1, 1]} : vector<8x128xf32> to vector<8x32xf32>
    %99 = arith.mulf %92, %53 : vector<8x32xf32>
    %100 = arith.mulf %91, %97 : vector<8x32xf32>
    %101 = arith.addf %99, %100 : vector<8x32xf32>
    %102 = math.tanh %101 : vector<8x32xf32>
    %103 = arith.mulf %98, %102 : vector<8x32xf32>
    %104 = vector.extract_strided_slice %79 {offsets = [0, 128], sizes = [8, 128], strides = [1, 1]} : vector<8x256xf32> to vector<8x128xf32>
    %105 = vector.broadcast %8 : vector<1x128xf32> to vector<8x128xf32>
    %106 = arith.addf %104, %105 : vector<8x128xf32>
    %107 = arith.addf %106, %80 : vector<8x128xf32>
    %cst_36 = arith.constant 5.000000e-01 : f32
    %108 = vector.broadcast %cst_36 : f32 to vector<8x128xf32>
    %109 = arith.mulf %108, %107 : vector<8x128xf32>
    %110 = math.tanh %109 : vector<8x128xf32>
    %cst_37 = arith.constant 5.000000e-01 : f32
    %111 = vector.broadcast %cst_37 : f32 to vector<8x128xf32>
    %112 = arith.mulf %111, %110 : vector<8x128xf32>
    %cst_38 = arith.constant 5.000000e-01 : f32
    %113 = vector.broadcast %cst_38 : f32 to vector<8x128xf32>
    %114 = arith.addf %112, %113 : vector<8x128xf32>
    %115 = vector.extract_strided_slice %114 {offsets = [0, 0], sizes = [8, 32], strides = [1, 1]} : vector<8x128xf32> to vector<8x32xf32>
    %116 = vector.extract_strided_slice %114 {offsets = [0, 32], sizes = [8, 32], strides = [1, 1]} : vector<8x128xf32> to vector<8x32xf32>
    %117 = vector.extract_strided_slice %114 {offsets = [0, 64], sizes = [8, 32], strides = [1, 1]} : vector<8x128xf32> to vector<8x32xf32>
    %cst_39 = arith.constant 2.000000e+00 : f32
    %118 = vector.broadcast %cst_39 : f32 to vector<8x32xf32>
    %119 = arith.mulf %118, %117 : vector<8x32xf32>
    %cst_40 = arith.constant 1.000000e+00 : f32
    %120 = vector.broadcast %cst_40 : f32 to vector<8x32xf32>
    %121 = arith.subf %119, %120 : vector<8x32xf32>
    %122 = vector.extract_strided_slice %114 {offsets = [0, 96], sizes = [8, 32], strides = [1, 1]} : vector<8x128xf32> to vector<8x32xf32>
    %123 = arith.mulf %116, %76 : vector<8x32xf32>
    %124 = arith.mulf %115, %121 : vector<8x32xf32>
    %125 = arith.addf %123, %124 : vector<8x32xf32>
    %126 = math.tanh %125 : vector<8x32xf32>
    %127 = arith.mulf %122, %126 : vector<8x32xf32>
    %cst_41 = arith.constant dense<0.000000e+00> : vector<8x256xf32>
    %128 = tpu.matmul %103, %6, %cst_41 {dimension_numbers = #tpu.dot_dimension_numbers<[1], [0], [0], [1], [0, 0, 1, 1], [], []>} : vector<8x32xf32>, vector<32x256xf32>, vector<8x256xf32> -> vector<8x256xf32>
    %cst_42 = arith.constant dense<0.000000e+00> : vector<8x128xf32>
    %129 = tpu.matmul %127, %7, %cst_42 {dimension_numbers = #tpu.dot_dimension_numbers<[1], [0], [0], [1], [0, 0, 1, 1], [], []>} : vector<8x32xf32>, vector<32x128xf32>, vector<8x128xf32> -> vector<8x128xf32>
    %130 = vector.extract_strided_slice %5 {offsets = [24, 0], sizes = [8, 128], strides = [1, 1]} : vector<64x128xf32> to vector<8x128xf32>
    %131 = vector.extract_strided_slice %128 {offsets = [0, 0], sizes = [8, 128], strides = [1, 1]} : vector<8x256xf32> to vector<8x128xf32>
    %132 = arith.addf %130, %131 : vector<8x128xf32>
    %cst_43 = arith.constant 5.000000e-01 : f32
    %133 = vector.broadcast %cst_43 : f32 to vector<8x128xf32>
    %134 = arith.mulf %133, %132 : vector<8x128xf32>
    %135 = math.tanh %134 : vector<8x128xf32>
    %cst_44 = arith.constant 5.000000e-01 : f32
    %136 = vector.broadcast %cst_44 : f32 to vector<8x128xf32>
    %137 = arith.mulf %136, %135 : vector<8x128xf32>
    %cst_45 = arith.constant 5.000000e-01 : f32
    %138 = vector.broadcast %cst_45 : f32 to vector<8x128xf32>
    %139 = arith.addf %137, %138 : vector<8x128xf32>
    %140 = vector.extract_strided_slice %139 {offsets = [0, 0], sizes = [8, 32], strides = [1, 1]} : vector<8x128xf32> to vector<8x32xf32>
    %141 = vector.extract_strided_slice %139 {offsets = [0, 32], sizes = [8, 32], strides = [1, 1]} : vector<8x128xf32> to vector<8x32xf32>
    %142 = vector.extract_strided_slice %139 {offsets = [0, 64], sizes = [8, 32], strides = [1, 1]} : vector<8x128xf32> to vector<8x32xf32>
    %cst_46 = arith.constant 2.000000e+00 : f32
    %143 = vector.broadcast %cst_46 : f32 to vector<8x32xf32>
    %144 = arith.mulf %143, %142 : vector<8x32xf32>
    %cst_47 = arith.constant 1.000000e+00 : f32
    %145 = vector.broadcast %cst_47 : f32 to vector<8x32xf32>
    %146 = arith.subf %144, %145 : vector<8x32xf32>
    %147 = vector.extract_strided_slice %139 {offsets = [0, 96], sizes = [8, 32], strides = [1, 1]} : vector<8x128xf32> to vector<8x32xf32>
    %148 = arith.mulf %141, %101 : vector<8x32xf32>
    %149 = arith.mulf %140, %146 : vector<8x32xf32>
    %150 = arith.addf %148, %149 : vector<8x32xf32>
    %151 = math.tanh %150 : vector<8x32xf32>
    %152 = arith.mulf %147, %151 : vector<8x32xf32>
    %153 = vector.extract_strided_slice %128 {offsets = [0, 128], sizes = [8, 128], strides = [1, 1]} : vector<8x256xf32> to vector<8x128xf32>
    %154 = vector.broadcast %8 : vector<1x128xf32> to vector<8x128xf32>
    %155 = arith.addf %153, %154 : vector<8x128xf32>
    %156 = arith.addf %155, %129 : vector<8x128xf32>
    %cst_48 = arith.constant 5.000000e-01 : f32
    %157 = vector.broadcast %cst_48 : f32 to vector<8x128xf32>
    %158 = arith.mulf %157, %156 : vector<8x128xf32>
    %159 = math.tanh %158 : vector<8x128xf32>
    %cst_49 = arith.constant 5.000000e-01 : f32
    %160 = vector.broadcast %cst_49 : f32 to vector<8x128xf32>
    %161 = arith.mulf %160, %159 : vector<8x128xf32>
    %cst_50 = arith.constant 5.000000e-01 : f32
    %162 = vector.broadcast %cst_50 : f32 to vector<8x128xf32>
    %163 = arith.addf %161, %162 : vector<8x128xf32>
    %164 = vector.extract_strided_slice %163 {offsets = [0, 0], sizes = [8, 32], strides = [1, 1]} : vector<8x128xf32> to vector<8x32xf32>
    %165 = vector.extract_strided_slice %163 {offsets = [0, 32], sizes = [8, 32], strides = [1, 1]} : vector<8x128xf32> to vector<8x32xf32>
    %166 = vector.extract_strided_slice %163 {offsets = [0, 64], sizes = [8, 32], strides = [1, 1]} : vector<8x128xf32> to vector<8x32xf32>
    %cst_51 = arith.constant 2.000000e+00 : f32
    %167 = vector.broadcast %cst_51 : f32 to vector<8x32xf32>
    %168 = arith.mulf %167, %166 : vector<8x32xf32>
    %cst_52 = arith.constant 1.000000e+00 : f32
    %169 = vector.broadcast %cst_52 : f32 to vector<8x32xf32>
    %170 = arith.subf %168, %169 : vector<8x32xf32>
    %171 = vector.extract_strided_slice %163 {offsets = [0, 96], sizes = [8, 32], strides = [1, 1]} : vector<8x128xf32> to vector<8x32xf32>
    %172 = arith.mulf %165, %125 : vector<8x32xf32>
    %173 = arith.mulf %164, %170 : vector<8x32xf32>
    %174 = arith.addf %172, %173 : vector<8x32xf32>
    %175 = math.tanh %174 : vector<8x32xf32>
    %176 = arith.mulf %171, %175 : vector<8x32xf32>
    %cst_53 = arith.constant dense<0.000000e+00> : vector<8x256xf32>
    %177 = tpu.matmul %152, %6, %cst_53 {dimension_numbers = #tpu.dot_dimension_numbers<[1], [0], [0], [1], [0, 0, 1, 1], [], []>} : vector<8x32xf32>, vector<32x256xf32>, vector<8x256xf32> -> vector<8x256xf32>
    %cst_54 = arith.constant dense<0.000000e+00> : vector<8x128xf32>
    %178 = tpu.matmul %176, %7, %cst_54 {dimension_numbers = #tpu.dot_dimension_numbers<[1], [0], [0], [1], [0, 0, 1, 1], [], []>} : vector<8x32xf32>, vector<32x128xf32>, vector<8x128xf32> -> vector<8x128xf32>
    %179 = vector.extract_strided_slice %5 {offsets = [32, 0], sizes = [8, 128], strides = [1, 1]} : vector<64x128xf32> to vector<8x128xf32>
    %180 = vector.extract_strided_slice %177 {offsets = [0, 0], sizes = [8, 128], strides = [1, 1]} : vector<8x256xf32> to vector<8x128xf32>
    %181 = arith.addf %179, %180 : vector<8x128xf32>
    %cst_55 = arith.constant 5.000000e-01 : f32
    %182 = vector.broadcast %cst_55 : f32 to vector<8x128xf32>
    %183 = arith.mulf %182, %181 : vector<8x128xf32>
    %184 = math.tanh %183 : vector<8x128xf32>
    %cst_56 = arith.constant 5.000000e-01 : f32
    %185 = vector.broadcast %cst_56 : f32 to vector<8x128xf32>
    %186 = arith.mulf %185, %184 : vector<8x128xf32>
    %cst_57 = arith.constant 5.000000e-01 : f32
    %187 = vector.broadcast %cst_57 : f32 to vector<8x128xf32>
    %188 = arith.addf %186, %187 : vector<8x128xf32>
    %189 = vector.extract_strided_slice %188 {offsets = [0, 0], sizes = [8, 32], strides = [1, 1]} : vector<8x128xf32> to vector<8x32xf32>
    %190 = vector.extract_strided_slice %188 {offsets = [0, 32], sizes = [8, 32], strides = [1, 1]} : vector<8x128xf32> to vector<8x32xf32>
    %191 = vector.extract_strided_slice %188 {offsets = [0, 64], sizes = [8, 32], strides = [1, 1]} : vector<8x128xf32> to vector<8x32xf32>
    %cst_58 = arith.constant 2.000000e+00 : f32
    %192 = vector.broadcast %cst_58 : f32 to vector<8x32xf32>
    %193 = arith.mulf %192, %191 : vector<8x32xf32>
    %cst_59 = arith.constant 1.000000e+00 : f32
    %194 = vector.broadcast %cst_59 : f32 to vector<8x32xf32>
    %195 = arith.subf %193, %194 : vector<8x32xf32>
    %196 = vector.extract_strided_slice %188 {offsets = [0, 96], sizes = [8, 32], strides = [1, 1]} : vector<8x128xf32> to vector<8x32xf32>
    %197 = arith.mulf %190, %150 : vector<8x32xf32>
    %198 = arith.mulf %189, %195 : vector<8x32xf32>
    %199 = arith.addf %197, %198 : vector<8x32xf32>
    %200 = math.tanh %199 : vector<8x32xf32>
    %201 = arith.mulf %196, %200 : vector<8x32xf32>
    %202 = vector.extract_strided_slice %177 {offsets = [0, 128], sizes = [8, 128], strides = [1, 1]} : vector<8x256xf32> to vector<8x128xf32>
    %203 = vector.broadcast %8 : vector<1x128xf32> to vector<8x128xf32>
    %204 = arith.addf %202, %203 : vector<8x128xf32>
    %205 = arith.addf %204, %178 : vector<8x128xf32>
    %cst_60 = arith.constant 5.000000e-01 : f32
    %206 = vector.broadcast %cst_60 : f32 to vector<8x128xf32>
    %207 = arith.mulf %206, %205 : vector<8x128xf32>
    %208 = math.tanh %207 : vector<8x128xf32>
    %cst_61 = arith.constant 5.000000e-01 : f32
    %209 = vector.broadcast %cst_61 : f32 to vector<8x128xf32>
    %210 = arith.mulf %209, %208 : vector<8x128xf32>
    %cst_62 = arith.constant 5.000000e-01 : f32
    %211 = vector.broadcast %cst_62 : f32 to vector<8x128xf32>
    %212 = arith.addf %210, %211 : vector<8x128xf32>
    %213 = vector.extract_strided_slice %212 {offsets = [0, 0], sizes = [8, 32], strides = [1, 1]} : vector<8x128xf32> to vector<8x32xf32>
    %214 = vector.extract_strided_slice %212 {offsets = [0, 32], sizes = [8, 32], strides = [1, 1]} : vector<8x128xf32> to vector<8x32xf32>
    %215 = vector.extract_strided_slice %212 {offsets = [0, 64], sizes = [8, 32], strides = [1, 1]} : vector<8x128xf32> to vector<8x32xf32>
    %cst_63 = arith.constant 2.000000e+00 : f32
    %216 = vector.broadcast %cst_63 : f32 to vector<8x32xf32>
    %217 = arith.mulf %216, %215 : vector<8x32xf32>
    %cst_64 = arith.constant 1.000000e+00 : f32
    %218 = vector.broadcast %cst_64 : f32 to vector<8x32xf32>
    %219 = arith.subf %217, %218 : vector<8x32xf32>
    %220 = vector.extract_strided_slice %212 {offsets = [0, 96], sizes = [8, 32], strides = [1, 1]} : vector<8x128xf32> to vector<8x32xf32>
    %221 = arith.mulf %214, %174 : vector<8x32xf32>
    %222 = arith.mulf %213, %219 : vector<8x32xf32>
    %223 = arith.addf %221, %222 : vector<8x32xf32>
    %224 = math.tanh %223 : vector<8x32xf32>
    %225 = arith.mulf %220, %224 : vector<8x32xf32>
    %cst_65 = arith.constant dense<0.000000e+00> : vector<8x256xf32>
    %226 = tpu.matmul %201, %6, %cst_65 {dimension_numbers = #tpu.dot_dimension_numbers<[1], [0], [0], [1], [0, 0, 1, 1], [], []>} : vector<8x32xf32>, vector<32x256xf32>, vector<8x256xf32> -> vector<8x256xf32>
    %cst_66 = arith.constant dense<0.000000e+00> : vector<8x128xf32>
    %227 = tpu.matmul %225, %7, %cst_66 {dimension_numbers = #tpu.dot_dimension_numbers<[1], [0], [0], [1], [0, 0, 1, 1], [], []>} : vector<8x32xf32>, vector<32x128xf32>, vector<8x128xf32> -> vector<8x128xf32>
    %228 = vector.extract_strided_slice %5 {offsets = [40, 0], sizes = [8, 128], strides = [1, 1]} : vector<64x128xf32> to vector<8x128xf32>
    %229 = vector.extract_strided_slice %226 {offsets = [0, 0], sizes = [8, 128], strides = [1, 1]} : vector<8x256xf32> to vector<8x128xf32>
    %230 = arith.addf %228, %229 : vector<8x128xf32>
    %cst_67 = arith.constant 5.000000e-01 : f32
    %231 = vector.broadcast %cst_67 : f32 to vector<8x128xf32>
    %232 = arith.mulf %231, %230 : vector<8x128xf32>
    %233 = math.tanh %232 : vector<8x128xf32>
    %cst_68 = arith.constant 5.000000e-01 : f32
    %234 = vector.broadcast %cst_68 : f32 to vector<8x128xf32>
    %235 = arith.mulf %234, %233 : vector<8x128xf32>
    %cst_69 = arith.constant 5.000000e-01 : f32
    %236 = vector.broadcast %cst_69 : f32 to vector<8x128xf32>
    %237 = arith.addf %235, %236 : vector<8x128xf32>
    %238 = vector.extract_strided_slice %237 {offsets = [0, 0], sizes = [8, 32], strides = [1, 1]} : vector<8x128xf32> to vector<8x32xf32>
    %239 = vector.extract_strided_slice %237 {offsets = [0, 32], sizes = [8, 32], strides = [1, 1]} : vector<8x128xf32> to vector<8x32xf32>
    %240 = vector.extract_strided_slice %237 {offsets = [0, 64], sizes = [8, 32], strides = [1, 1]} : vector<8x128xf32> to vector<8x32xf32>
    %cst_70 = arith.constant 2.000000e+00 : f32
    %241 = vector.broadcast %cst_70 : f32 to vector<8x32xf32>
    %242 = arith.mulf %241, %240 : vector<8x32xf32>
    %cst_71 = arith.constant 1.000000e+00 : f32
    %243 = vector.broadcast %cst_71 : f32 to vector<8x32xf32>
    %244 = arith.subf %242, %243 : vector<8x32xf32>
    %245 = vector.extract_strided_slice %237 {offsets = [0, 96], sizes = [8, 32], strides = [1, 1]} : vector<8x128xf32> to vector<8x32xf32>
    %246 = arith.mulf %239, %199 : vector<8x32xf32>
    %247 = arith.mulf %238, %244 : vector<8x32xf32>
    %248 = arith.addf %246, %247 : vector<8x32xf32>
    %249 = math.tanh %248 : vector<8x32xf32>
    %250 = arith.mulf %245, %249 : vector<8x32xf32>
    %251 = vector.extract_strided_slice %226 {offsets = [0, 128], sizes = [8, 128], strides = [1, 1]} : vector<8x256xf32> to vector<8x128xf32>
    %252 = vector.broadcast %8 : vector<1x128xf32> to vector<8x128xf32>
    %253 = arith.addf %251, %252 : vector<8x128xf32>
    %254 = arith.addf %253, %227 : vector<8x128xf32>
    %cst_72 = arith.constant 5.000000e-01 : f32
    %255 = vector.broadcast %cst_72 : f32 to vector<8x128xf32>
    %256 = arith.mulf %255, %254 : vector<8x128xf32>
    %257 = math.tanh %256 : vector<8x128xf32>
    %cst_73 = arith.constant 5.000000e-01 : f32
    %258 = vector.broadcast %cst_73 : f32 to vector<8x128xf32>
    %259 = arith.mulf %258, %257 : vector<8x128xf32>
    %cst_74 = arith.constant 5.000000e-01 : f32
    %260 = vector.broadcast %cst_74 : f32 to vector<8x128xf32>
    %261 = arith.addf %259, %260 : vector<8x128xf32>
    %262 = vector.extract_strided_slice %261 {offsets = [0, 0], sizes = [8, 32], strides = [1, 1]} : vector<8x128xf32> to vector<8x32xf32>
    %263 = vector.extract_strided_slice %261 {offsets = [0, 32], sizes = [8, 32], strides = [1, 1]} : vector<8x128xf32> to vector<8x32xf32>
    %264 = vector.extract_strided_slice %261 {offsets = [0, 64], sizes = [8, 32], strides = [1, 1]} : vector<8x128xf32> to vector<8x32xf32>
    %cst_75 = arith.constant 2.000000e+00 : f32
    %265 = vector.broadcast %cst_75 : f32 to vector<8x32xf32>
    %266 = arith.mulf %265, %264 : vector<8x32xf32>
    %cst_76 = arith.constant 1.000000e+00 : f32
    %267 = vector.broadcast %cst_76 : f32 to vector<8x32xf32>
    %268 = arith.subf %266, %267 : vector<8x32xf32>
    %269 = vector.extract_strided_slice %261 {offsets = [0, 96], sizes = [8, 32], strides = [1, 1]} : vector<8x128xf32> to vector<8x32xf32>
    %270 = arith.mulf %263, %223 : vector<8x32xf32>
    %271 = arith.mulf %262, %268 : vector<8x32xf32>
    %272 = arith.addf %270, %271 : vector<8x32xf32>
    %273 = math.tanh %272 : vector<8x32xf32>
    %274 = arith.mulf %269, %273 : vector<8x32xf32>
    %cst_77 = arith.constant dense<0.000000e+00> : vector<8x256xf32>
    %275 = tpu.matmul %250, %6, %cst_77 {dimension_numbers = #tpu.dot_dimension_numbers<[1], [0], [0], [1], [0, 0, 1, 1], [], []>} : vector<8x32xf32>, vector<32x256xf32>, vector<8x256xf32> -> vector<8x256xf32>
    %cst_78 = arith.constant dense<0.000000e+00> : vector<8x128xf32>
    %276 = tpu.matmul %274, %7, %cst_78 {dimension_numbers = #tpu.dot_dimension_numbers<[1], [0], [0], [1], [0, 0, 1, 1], [], []>} : vector<8x32xf32>, vector<32x128xf32>, vector<8x128xf32> -> vector<8x128xf32>
    %277 = vector.extract_strided_slice %5 {offsets = [48, 0], sizes = [8, 128], strides = [1, 1]} : vector<64x128xf32> to vector<8x128xf32>
    %278 = vector.extract_strided_slice %275 {offsets = [0, 0], sizes = [8, 128], strides = [1, 1]} : vector<8x256xf32> to vector<8x128xf32>
    %279 = arith.addf %277, %278 : vector<8x128xf32>
    %cst_79 = arith.constant 5.000000e-01 : f32
    %280 = vector.broadcast %cst_79 : f32 to vector<8x128xf32>
    %281 = arith.mulf %280, %279 : vector<8x128xf32>
    %282 = math.tanh %281 : vector<8x128xf32>
    %cst_80 = arith.constant 5.000000e-01 : f32
    %283 = vector.broadcast %cst_80 : f32 to vector<8x128xf32>
    %284 = arith.mulf %283, %282 : vector<8x128xf32>
    %cst_81 = arith.constant 5.000000e-01 : f32
    %285 = vector.broadcast %cst_81 : f32 to vector<8x128xf32>
    %286 = arith.addf %284, %285 : vector<8x128xf32>
    %287 = vector.extract_strided_slice %286 {offsets = [0, 0], sizes = [8, 32], strides = [1, 1]} : vector<8x128xf32> to vector<8x32xf32>
    %288 = vector.extract_strided_slice %286 {offsets = [0, 32], sizes = [8, 32], strides = [1, 1]} : vector<8x128xf32> to vector<8x32xf32>
    %289 = vector.extract_strided_slice %286 {offsets = [0, 64], sizes = [8, 32], strides = [1, 1]} : vector<8x128xf32> to vector<8x32xf32>
    %cst_82 = arith.constant 2.000000e+00 : f32
    %290 = vector.broadcast %cst_82 : f32 to vector<8x32xf32>
    %291 = arith.mulf %290, %289 : vector<8x32xf32>
    %cst_83 = arith.constant 1.000000e+00 : f32
    %292 = vector.broadcast %cst_83 : f32 to vector<8x32xf32>
    %293 = arith.subf %291, %292 : vector<8x32xf32>
    %294 = vector.extract_strided_slice %286 {offsets = [0, 96], sizes = [8, 32], strides = [1, 1]} : vector<8x128xf32> to vector<8x32xf32>
    %295 = arith.mulf %288, %248 : vector<8x32xf32>
    %296 = arith.mulf %287, %293 : vector<8x32xf32>
    %297 = arith.addf %295, %296 : vector<8x32xf32>
    %298 = math.tanh %297 : vector<8x32xf32>
    %299 = arith.mulf %294, %298 : vector<8x32xf32>
    %300 = vector.extract_strided_slice %275 {offsets = [0, 128], sizes = [8, 128], strides = [1, 1]} : vector<8x256xf32> to vector<8x128xf32>
    %301 = vector.broadcast %8 : vector<1x128xf32> to vector<8x128xf32>
    %302 = arith.addf %300, %301 : vector<8x128xf32>
    %303 = arith.addf %302, %276 : vector<8x128xf32>
    %cst_84 = arith.constant 5.000000e-01 : f32
    %304 = vector.broadcast %cst_84 : f32 to vector<8x128xf32>
    %305 = arith.mulf %304, %303 : vector<8x128xf32>
    %306 = math.tanh %305 : vector<8x128xf32>
    %cst_85 = arith.constant 5.000000e-01 : f32
    %307 = vector.broadcast %cst_85 : f32 to vector<8x128xf32>
    %308 = arith.mulf %307, %306 : vector<8x128xf32>
    %cst_86 = arith.constant 5.000000e-01 : f32
    %309 = vector.broadcast %cst_86 : f32 to vector<8x128xf32>
    %310 = arith.addf %308, %309 : vector<8x128xf32>
    %311 = vector.extract_strided_slice %310 {offsets = [0, 0], sizes = [8, 32], strides = [1, 1]} : vector<8x128xf32> to vector<8x32xf32>
    %312 = vector.extract_strided_slice %310 {offsets = [0, 32], sizes = [8, 32], strides = [1, 1]} : vector<8x128xf32> to vector<8x32xf32>
    %313 = vector.extract_strided_slice %310 {offsets = [0, 64], sizes = [8, 32], strides = [1, 1]} : vector<8x128xf32> to vector<8x32xf32>
    %cst_87 = arith.constant 2.000000e+00 : f32
    %314 = vector.broadcast %cst_87 : f32 to vector<8x32xf32>
    %315 = arith.mulf %314, %313 : vector<8x32xf32>
    %cst_88 = arith.constant 1.000000e+00 : f32
    %316 = vector.broadcast %cst_88 : f32 to vector<8x32xf32>
    %317 = arith.subf %315, %316 : vector<8x32xf32>
    %318 = vector.extract_strided_slice %310 {offsets = [0, 96], sizes = [8, 32], strides = [1, 1]} : vector<8x128xf32> to vector<8x32xf32>
    %319 = arith.mulf %312, %272 : vector<8x32xf32>
    %320 = arith.mulf %311, %317 : vector<8x32xf32>
    %321 = arith.addf %319, %320 : vector<8x32xf32>
    %322 = math.tanh %321 : vector<8x32xf32>
    %323 = arith.mulf %318, %322 : vector<8x32xf32>
    %cst_89 = arith.constant dense<0.000000e+00> : vector<8x256xf32>
    %324 = tpu.matmul %299, %6, %cst_89 {dimension_numbers = #tpu.dot_dimension_numbers<[1], [0], [0], [1], [0, 0, 1, 1], [], []>} : vector<8x32xf32>, vector<32x256xf32>, vector<8x256xf32> -> vector<8x256xf32>
    %cst_90 = arith.constant dense<0.000000e+00> : vector<8x128xf32>
    %325 = tpu.matmul %323, %7, %cst_90 {dimension_numbers = #tpu.dot_dimension_numbers<[1], [0], [0], [1], [0, 0, 1, 1], [], []>} : vector<8x32xf32>, vector<32x128xf32>, vector<8x128xf32> -> vector<8x128xf32>
    %326 = vector.extract_strided_slice %5 {offsets = [56, 0], sizes = [8, 128], strides = [1, 1]} : vector<64x128xf32> to vector<8x128xf32>
    %327 = vector.extract_strided_slice %324 {offsets = [0, 0], sizes = [8, 128], strides = [1, 1]} : vector<8x256xf32> to vector<8x128xf32>
    %328 = arith.addf %326, %327 : vector<8x128xf32>
    %cst_91 = arith.constant 5.000000e-01 : f32
    %329 = vector.broadcast %cst_91 : f32 to vector<8x128xf32>
    %330 = arith.mulf %329, %328 : vector<8x128xf32>
    %331 = math.tanh %330 : vector<8x128xf32>
    %cst_92 = arith.constant 5.000000e-01 : f32
    %332 = vector.broadcast %cst_92 : f32 to vector<8x128xf32>
    %333 = arith.mulf %332, %331 : vector<8x128xf32>
    %cst_93 = arith.constant 5.000000e-01 : f32
    %334 = vector.broadcast %cst_93 : f32 to vector<8x128xf32>
    %335 = arith.addf %333, %334 : vector<8x128xf32>
    %336 = vector.extract_strided_slice %335 {offsets = [0, 0], sizes = [8, 32], strides = [1, 1]} : vector<8x128xf32> to vector<8x32xf32>
    %337 = vector.extract_strided_slice %335 {offsets = [0, 32], sizes = [8, 32], strides = [1, 1]} : vector<8x128xf32> to vector<8x32xf32>
    %338 = vector.extract_strided_slice %335 {offsets = [0, 64], sizes = [8, 32], strides = [1, 1]} : vector<8x128xf32> to vector<8x32xf32>
    %cst_94 = arith.constant 2.000000e+00 : f32
    %339 = vector.broadcast %cst_94 : f32 to vector<8x32xf32>
    %340 = arith.mulf %339, %338 : vector<8x32xf32>
    %cst_95 = arith.constant 1.000000e+00 : f32
    %341 = vector.broadcast %cst_95 : f32 to vector<8x32xf32>
    %342 = arith.subf %340, %341 : vector<8x32xf32>
    %343 = vector.extract_strided_slice %335 {offsets = [0, 96], sizes = [8, 32], strides = [1, 1]} : vector<8x128xf32> to vector<8x32xf32>
    %344 = arith.mulf %337, %297 : vector<8x32xf32>
    %345 = arith.mulf %336, %342 : vector<8x32xf32>
    %346 = arith.addf %344, %345 : vector<8x32xf32>
    %347 = math.tanh %346 : vector<8x32xf32>
    %348 = arith.mulf %343, %347 : vector<8x32xf32>
    %349 = vector.extract_strided_slice %324 {offsets = [0, 128], sizes = [8, 128], strides = [1, 1]} : vector<8x256xf32> to vector<8x128xf32>
    %350 = vector.broadcast %8 : vector<1x128xf32> to vector<8x128xf32>
    %351 = arith.addf %349, %350 : vector<8x128xf32>
    %352 = arith.addf %351, %325 : vector<8x128xf32>
    %cst_96 = arith.constant 5.000000e-01 : f32
    %353 = vector.broadcast %cst_96 : f32 to vector<8x128xf32>
    %354 = arith.mulf %353, %352 : vector<8x128xf32>
    %355 = math.tanh %354 : vector<8x128xf32>
    %cst_97 = arith.constant 5.000000e-01 : f32
    %356 = vector.broadcast %cst_97 : f32 to vector<8x128xf32>
    %357 = arith.mulf %356, %355 : vector<8x128xf32>
    %cst_98 = arith.constant 5.000000e-01 : f32
    %358 = vector.broadcast %cst_98 : f32 to vector<8x128xf32>
    %359 = arith.addf %357, %358 : vector<8x128xf32>
    %360 = vector.extract_strided_slice %359 {offsets = [0, 0], sizes = [8, 32], strides = [1, 1]} : vector<8x128xf32> to vector<8x32xf32>
    %361 = vector.extract_strided_slice %359 {offsets = [0, 32], sizes = [8, 32], strides = [1, 1]} : vector<8x128xf32> to vector<8x32xf32>
    %362 = vector.extract_strided_slice %359 {offsets = [0, 64], sizes = [8, 32], strides = [1, 1]} : vector<8x128xf32> to vector<8x32xf32>
    %cst_99 = arith.constant 2.000000e+00 : f32
    %363 = vector.broadcast %cst_99 : f32 to vector<8x32xf32>
    %364 = arith.mulf %363, %362 : vector<8x32xf32>
    %cst_100 = arith.constant 1.000000e+00 : f32
    %365 = vector.broadcast %cst_100 : f32 to vector<8x32xf32>
    %366 = arith.subf %364, %365 : vector<8x32xf32>
    %367 = vector.extract_strided_slice %359 {offsets = [0, 96], sizes = [8, 32], strides = [1, 1]} : vector<8x128xf32> to vector<8x32xf32>
    %368 = arith.mulf %361, %321 : vector<8x32xf32>
    %369 = arith.mulf %360, %366 : vector<8x32xf32>
    %370 = arith.addf %368, %369 : vector<8x32xf32>
    %371 = math.tanh %370 : vector<8x32xf32>
    %372 = arith.mulf %367, %371 : vector<8x32xf32>
    %cst_101 = arith.constant dense<0.000000e+00> : vector<8x256xf32>
    %373 = tpu.matmul %348, %6, %cst_101 {dimension_numbers = #tpu.dot_dimension_numbers<[1], [0], [0], [1], [0, 0, 1, 1], [], []>} : vector<8x32xf32>, vector<32x256xf32>, vector<8x256xf32> -> vector<8x256xf32>
    %cst_102 = arith.constant dense<0.000000e+00> : vector<8x128xf32>
    %374 = tpu.matmul %372, %7, %cst_102 {dimension_numbers = #tpu.dot_dimension_numbers<[1], [0], [0], [1], [0, 0, 1, 1], [], []>} : vector<8x32xf32>, vector<32x128xf32>, vector<8x128xf32> -> vector<8x128xf32>
    %375 = vector.extract_strided_slice %373 {offsets = [0, 128], sizes = [8, 128], strides = [1, 1]} : vector<8x256xf32> to vector<8x128xf32>
    %376 = vector.broadcast %8 : vector<1x128xf32> to vector<8x128xf32>
    %377 = arith.addf %375, %376 : vector<8x128xf32>
    %378 = arith.addf %377, %374 : vector<8x128xf32>
    %cst_103 = arith.constant 5.000000e-01 : f32
    %379 = vector.broadcast %cst_103 : f32 to vector<8x128xf32>
    %380 = arith.mulf %379, %378 : vector<8x128xf32>
    %381 = math.tanh %380 : vector<8x128xf32>
    %cst_104 = arith.constant 5.000000e-01 : f32
    %382 = vector.broadcast %cst_104 : f32 to vector<8x128xf32>
    %383 = arith.mulf %382, %381 : vector<8x128xf32>
    %cst_105 = arith.constant 5.000000e-01 : f32
    %384 = vector.broadcast %cst_105 : f32 to vector<8x128xf32>
    %385 = arith.addf %383, %384 : vector<8x128xf32>
    %386 = vector.extract_strided_slice %385 {offsets = [0, 0], sizes = [8, 32], strides = [1, 1]} : vector<8x128xf32> to vector<8x32xf32>
    %387 = vector.extract_strided_slice %385 {offsets = [0, 32], sizes = [8, 32], strides = [1, 1]} : vector<8x128xf32> to vector<8x32xf32>
    %388 = vector.extract_strided_slice %385 {offsets = [0, 64], sizes = [8, 32], strides = [1, 1]} : vector<8x128xf32> to vector<8x32xf32>
    %cst_106 = arith.constant 2.000000e+00 : f32
    %389 = vector.broadcast %cst_106 : f32 to vector<8x32xf32>
    %390 = arith.mulf %389, %388 : vector<8x32xf32>
    %cst_107 = arith.constant 1.000000e+00 : f32
    %391 = vector.broadcast %cst_107 : f32 to vector<8x32xf32>
    %392 = arith.subf %390, %391 : vector<8x32xf32>
    %393 = vector.extract_strided_slice %385 {offsets = [0, 96], sizes = [8, 32], strides = [1, 1]} : vector<8x128xf32> to vector<8x32xf32>
    %394 = arith.mulf %387, %370 : vector<8x32xf32>
    %395 = arith.mulf %386, %392 : vector<8x32xf32>
    %396 = arith.addf %394, %395 : vector<8x32xf32>
    %397 = math.tanh %396 : vector<8x32xf32>
    %398 = arith.mulf %393, %397 : vector<8x32xf32>
    %cst_108 = arith.constant 0.000000e+00 : f32
    %399 = vector.broadcast %cst_108 : f32 to vector<8x32xf32>
    %400 = arith.maximumf %398, %399 : vector<8x32xf32>
    %c0_109 = arith.constant 0 : index
    %c0_110 = arith.constant 0 : index
    %401 = vector.load %arg6[%c0_109, %c0_110] : memref<32x4xf32, #tpu.memory_space<vmem>>, vector<32x4xf32>
    %cst_111 = arith.constant dense<0.000000e+00> : vector<8x4xf32>
    %402 = tpu.matmul %400, %401, %cst_111 {dimension_numbers = #tpu.dot_dimension_numbers<[1], [0], [0], [1], [0, 0, 1, 1], [], []>} : vector<8x32xf32>, vector<32x4xf32>, vector<8x4xf32> -> vector<8x4xf32>
    %c0_112 = arith.constant 0 : index
    %c0_113 = arith.constant 0 : index
    %403 = vector.load %arg7[%c0_112, %c0_113] : memref<1x4xf32, #tpu.memory_space<vmem>>, vector<1x4xf32>
    %404 = vector.broadcast %403 : vector<1x4xf32> to vector<8x4xf32>
    %405 = arith.addf %402, %404 : vector<8x4xf32>
    %c0_114 = arith.constant 0 : index
    %c0_115 = arith.constant 0 : index
    %406 = vector.load %arg8[%c0_114, %c0_115] : memref<8x4xf32, #tpu.memory_space<vmem>>, vector<8x4xf32>
    tpu.vector_store %arg8[%c0_114, %c0_115], %405 {strides = array<i32>} : memref<8x4xf32, #tpu.memory_space<vmem>>, vector<8x4xf32>,
    return
  }
}

</mosaic_0001>

<bundles_post_ra>
// kernel: lstm_backbone_forward.1
= control target key start
LH: loop header
LB: loop body
LE: loop exit
PB: predicated region body
PF: predicated region fallthrough
CT: control target
= control target key end

     0   :  { %vm45_vm0 = vcmask 64512   ;;  %s2186_s13 = smov 32   ;;  %v2187_v21 = vmov 0.0   ;;  %vm214_vm1 = vcmask 261120   ;;  %vm2189_vm2 = vmmov 0   ;;  %s2555_s1 = inlined_call_operand.vmem [shape: f32[8,128], index: 1, kind: input, shape index: {}]   ;;  %s2556_s0 = inlined_call_operand.vmem [shape: f32[64,8], index: 0, kind: input, shape index: {}]   ;;  %s2557_s2 = inlined_call_operand.vmem [shape: f32[1,128], index: 2, kind: input, shape index: {}]   ;;  %s2558_s3 = inlined_call_operand.vmem [shape: f32[32,256], index: 3, kind: input, shape index: {}]   ;;  %s2559_s5 = inlined_call_operand.vmem [shape: f32[1,128], index: 5, kind: input, shape index: {}]   ;;  %s2560_s4 = inlined_call_operand.vmem [shape: f32[32,128], index: 4, kind: input, shape index: {}]   ;;  %s2561_s6 = inlined_call_operand.vmem [shape: f32[32,4], index: 6, kind: input, shape index: {}]   ;;  %s2562_s7 = inlined_call_operand.vmem [shape: f32[1,4], index: 7, kind: input, shape index: {}]   ;;  %s2563_s8 = inlined_call_operand.vmem [shape: f32[8,4], index: 8, kind: output, shape index: {}]  }
   0x1   :  { %v37_v0 = vld [vmem:[%s2555_s1] sm:$0xff]  ;;  %v30_v2 = vld [vmem:[%s2556_s0 + $0x8] sm:$0xff]  ;;  %s2185_s1 = smov 64   ;;  %v178_v19 = vld [vmem:[%s2558_s3 + $0x18] sm:$0xff]  ;;  %281 = vmatprep.mubr.f32.mxu1 %v2187_v21  ;;  %vm1804_vm3 = vcmask 31744  }
   0x2   :  { %v29_v1 = vld [vmem:[%s2556_s0] sm:$0xff]  ;;  %1902 = vmatprep.subr.mxu0 %v37_v0  ;;  %v176_v18 = vld [vmem:[%s2558_s3 + $0x8] sm:$0xff]  ;;  %v177_v23 = vld [vmem:[%s2558_s3 + $0x10] sm:$0xff] }
   0x3   :  { %1904 = vmatprep.mubr.msk.f32.mxu0 %vm45_vm0, %v29_v1  ;;  %1903 = vmatpush3.msra.mxu0 %v37_v0  ;;  %v2249_v3 = vld [vmem:[%s2557_s2] ss:$0 sm:$0xff]  ;;  %v2267_v22 = vpack.c.bf16 %v178_v19, %v176_v18  ;;  %v180_v24 = vld [vmem:[%s2558_s3 + $0x28] sm:$0xff]  ;;  %v182_v25 = vld [vmem:[%s2558_s3 + $0x38] sm:$0xff] }
   0x4   :  { %1905 = vmatmul.mubr.msk.f32.vlgmr.msra.gmra.mrb[0].mxu0 %vm45_vm0, %v30_v2  ;;  %v175_v20 = vld [vmem:[%s2558_s3] sm:$0xff]  ;;  %v2280_v27 = vpack.c.bf16 %v182_v25, %v180_v24  ;;  %v181_v29 = vld [vmem:[%s2558_s3 + $0x30] sm:$0xff]  ;;  %v32_v0 = vld [vmem:[%s2556_s0 + $0x18] sm:$0xff]  ;;  %v2188_v2 = vmov 0.0|0.0  }
   0x5   :  { %v2278_v26 = vpack.c.bf16 %v177_v23, %v175_v20  ;;  %v179_v28 = vld [vmem:[%s2558_s3 + $0x20] sm:$0xff]  ;;  %2005 = vmatprep.subr.bf16.mxu1 %v2267_v22  ;;  %v31_v63 = vld [vmem:[%s2556_s0 + $0x10] sm:$0xff]  ;;  %2020 = vmatprep.subr.bf16.mxu0 %v2188_v2 }
   0x6   :  { %v2290_v30 = vpack.c.bf16 %v181_v29, %v179_v28  ;;  %v2307_v36 = vld [vmem:[%s2559_s5] ss:$0 sm:$0xff]  ;;  %1907 = vmatprep.mubr.msk.f32.mxu0 %vm45_vm0, %v31_v63 }
   0x7   :  { %2007 = vmatpush1.bf16.msra.mxu1 %v2278_v26  ;;  %v33_v1 = vld [vmem:[%s2556_s0 + $0x20] sm:$0xff] }
   0x8   :  { %2009 = vmatprep.subr.bf16.mxu1 %v2280_v27  ;;  %1908 = vmatmul.mubr.msk.f32.gmra.mrb[2].mxu0 %vm45_vm0, %v32_v0 }
   0x9   :  { %1910 = vmatprep.mubr.msk.f32.mxu0 %vm45_vm0, %v33_v1 }
   0xb   :  { %2011 = vmatpush1.bf16.msra.mxu1 %v2290_v30 }
   0xc   :  { %2013 = vmatprep.subr.bf16.mxu1 %v2267_v22 }
  0xd7   :  { %v1906_v4 = vpop.f32.mrb[0].mxu0 }
  0xd8   :  { %v136_v5 = vpop.f32.mrb[1].mxu0  ;;  %v142_v35 = vadd.f32 %v1906_v4, %v2249_v3  ;;  %v183_v4 = vld [vmem:[%s2560_s4] sm:$0xff] }
  0xd9   :  { %v137_v6 = vadd.f32 %v2249_v3, %v136_v5  ;;  %v184_v5 = vld [vmem:[%s2560_s4 + $0x8] sm:$0xff] }
  0xdb   :  { %v188_v7 = vmul.f32 0.5, %v137_v6  ;;  %v2338_v6 = vpack.c.bf16 %v184_v5, %v183_v4  ;;  %v2372_v19 = vpop.f32.mrb[2].mxu0 }
  0xdc   :  { %v146_v20 = vpop.f32.mrb[3].mxu0 }
  0xdd   :  { %2121 = vtanh.f32 %v188_v7  ;;  %v185_v7 = vld [vmem:[%s2560_s4 + $0x10] sm:$0xff]  ;;  %2022 = vmatpush3.bf16.msra.mxu0 %v2338_v6 }
  0xde   :  { %2023 = vmatprep.subr.bf16.mxu0 %v2188_v2 }
  0xe7   :  { %v2122_v8 = vpop.eup %2121 }
  0xe8   :  { %v190_v9 = vmul.f32 0.5, %v2122_v8  ;;  %v186_v8 = vld [vmem:[%s2560_s4 + $0x18] sm:$0xff] }
  0xea   :  { %v191_v10 = vadd.f32 0.5, %v190_v9  ;;  %v34_v9 = vld [vmem:[%s2556_s0 + $0x28] sm:$0xff] }
  0xeb   :  { %1911 = vmatmul.mubr.msk.f32.gmra.mrb[4].mxu0 %vm45_vm0, %v34_v9 }
  0xec   :  { %v192_v11 = vmul.f32 2.0, %v191_v10  ;;  %v194_v15 = vmul.f32 0.0, %v191_v10 }
  0xee   :  { %v1819_v12 = vadd.f32 -1.0, %v192_v11  ;;  %v35_v11 = vld [vmem:[%s2556_s0 + $0x30] sm:$0xff] }
  0xef   :  { %1913 = vmatprep.mubr.msk.f32.mxu0 %vm45_vm0, %v35_v11  ;;  %v152_v11 = vadd.f32 %v2372_v19, %v2249_v3 }
  0xf0   :  { %196 = vrot.lane.b32.xlu0 %v1819_v12, %s2185_s1  ;;  %v36_v12 = vld [vmem:[%s2556_s0 + $0x38] sm:$0xff] }
  0xf1   :  { %1914 = vmatmul.mubr.msk.f32.gmra.mrb[6].mxu0 %vm45_vm0, %v36_v12 }
  0xf2   :  { %1924 = vmatprep.mubr.msk.f32.mxu0 %vm2189_vm2, %v2187_v21 }
 0x162   :  { %v197_v13 = vpop.permute.xlu0 %196 }
 0x163   :  { %v199_v14 = vmul.f32 %v197_v13, %v191_v10 }
 0x165   :  { %201 = vrot.lane.b32.xlu0 %v199_v14, %s2186_s13 }
 0x1be   :  { %v2374_v23 = vpop.f32.mrb[4].mxu0 }
 0x1bf   :  { %v2376_v24 = vpop.f32.mrb[5].mxu0 }
 0x1c4   :  { %v2378_v25 = vpop.f32.mrb[6].mxu0 }
 0x1c5   :  { %v2380_v28 = vpop.f32.mrb[7].mxu0 }
 0x1d7   :  { %v202_v16 = vpop.permute.xlu0 %201 }
 0x1d8   :  { %v2254_v17 = vadd.f32 %v202_v16, %v194_v15 }
 0x1da   :  { %2123 = vtanh.f32 %v2254_v17 }
 0x1e4   :  { %v2124_v31 = vpop.eup %2123 }
 0x1e5   :  { %207 = vrot.lane.b32.xlu1 %v2124_v31, %s2185_s1 }
 0x257   :  { %v208_v32 = vpop.permute.xlu1 %207 }
 0x258   :  { %v210_v33 = vmul.f32 %v208_v32, %v191_v10  ;;  %v2352_v10 = vpack.c.bf16 %v186_v8, %v185_v7  ;;  %v147_v32 = vadd.f32 %v2249_v3, %v146_v20 }
 0x25a   :  { %212 = vrot.lane.b32.xlu1 %v210_v33, %s2186_s13  ;;  %2025 = vmatpush3.bf16.msra.mxu0 %v2352_v10 }
 0x25b   :  { %2034 = vmatprep.subr.bf16.mxu0 %v2188_v2 }
 0x2cc   :  { %v213_v34 = vpop.permute.xlu1 %212 }
 0x2cd   :  { %1820 = vmatmul.mubr.msk.f32.vlgmr.msra.gmra.mrb[0].mxu1 %vm214_vm1, %v213_v34 }
 0x2ce   :  { %2015 = vmatpush1.bf16.msra.mxu1 %v2278_v26  ;;  %411 = vmatprep.mubr.f32.mxu1 %v2187_v21 }
 0x2cf   :  { %2017 = vmatprep.subr.bf16.mxu1 %v2280_v27 }
 0x2d2   :  { %2019 = vmatpush1.bf16.msra.mxu1 %v2290_v30 }
 0x2d3   :  { %2027 = vmatprep.subr.bf16.mxu1 %v2267_v22 }
 0x3a0   :  { %v283_v37 = vpop.f32.mrb[0].mxu1 }
 0x3a1   :  { %v288_v38 = vadd.f32 %v283_v37, %v142_v35  ;;  %v285_v39 = vpop.f32.mrb[1].mxu1 }
 0x3a2   :  { %v318_v40 = vadd.f32 %v2307_v36, %v285_v39 }
 0x3a3   :  { %v289_v41 = vmul.f32 0.5, %v288_v38 }
 0x3a4   :  { %v319_v42 = vmul.f32 0.5, %v318_v40 }
 0x3a5   :  { %2125 = vtanh.f32 %v289_v41 }
 0x3a6   :  { %2127 = vtanh.f32 %v319_v42 }
 0x3af   :  { %v2126_v43 = vpop.eup %2125 }
 0x3b0   :  { %v2128_v44 = vpop.eup %2127  ;;  %v291_v45 = vmul.f32 0.5, %v2126_v43 }
 0x3b1   :  { %v321_v46 = vmul.f32 0.5, %v2128_v44 }
 0x3b2   :  { %v292_v47 = vadd.f32 0.5, %v291_v45 }
 0x3b3   :  { %v322_v48 = vadd.f32 0.5, %v321_v46 }
 0x3b4   :  { %v293_v49 = vmul.f32 2.0, %v292_v47  ;;  %v295_v57 = vmul.f32 %v292_v47, %v2254_v17 }
 0x3b5   :  { %v323_v50 = vmul.f32 2.0, %v322_v48  ;;  %v325_v59 = vmul.f32 0.0, %v322_v48 }
 0x3b6   :  { %v1821_v51 = vadd.f32 -1.0, %v293_v49 }
 0x3b7   :  { %v1823_v52 = vadd.f32 -1.0, %v323_v50 }
 0x3b8   :  { %297 = vrot.lane.b32.xlu0 %v1821_v51, %s2185_s1 }
 0x3b9   :  { %327 = vrot.lane.b32.xlu1 %v1823_v52, %s2185_s1 }
 0x42a   :  { %v298_v53 = vpop.permute.xlu0 %297 }
 0x42b   :  { %v300_v54 = vmul.f32 %v298_v53, %v292_v47  ;;  %v328_v55 = vpop.permute.xlu1 %327 }
 0x42c   :  { %v330_v56 = vmul.f32 %v328_v55, %v322_v48 }
 0x42d   :  { %302 = vrot.lane.b32.xlu0 %v300_v54, %s2186_s13 }
 0x42e   :  { %332 = vrot.lane.b32.xlu1 %v330_v56, %s2186_s13 }
 0x49f   :  { %v303_v58 = vpop.permute.xlu0 %302 }
 0x4a0   :  { %v2315_v60 = vadd.f32 %v303_v58, %v295_v57  ;;  %v333_v61 = vpop.permute.xlu1 %332 }
 0x4a1   :  { %v2317_v62 = vadd.f32 %v333_v61, %v325_v59 }
 0x4a2   :  { %2129 = vtanh.f32 %v2315_v60 }
 0x4a3   :  { %2131 = vtanh.f32 %v2317_v62 }
 0x4ac   :  { %v2130_v13 = vpop.eup %2129 }
 0x4ad   :  { %v2132_v14 = vpop.eup %2131  ;;  %308 = vrot.lane.b32.xlu0 %v2130_v13, %s2185_s1 }
 0x4ae   :  { %338 = vrot.lane.b32.xlu1 %v2132_v14, %s2185_s1 }
 0x51f   :  { %v309_v15 = vpop.permute.xlu0 %308 }
 0x520   :  { %v311_v16 = vmul.f32 %v309_v15, %v292_v47  ;;  %v339_v17 = vpop.permute.xlu1 %338 }
 0x521   :  { %v341_v18 = vmul.f32 %v339_v17, %v322_v48 }
 0x522   :  { %343 = vrot.lane.b32.xlu0 %v311_v16, %s2186_s13 }
 0x523   :  { %419 = vrot.lane.b32.xlu1 %v341_v18, %s2186_s13 }
 0x594   :  { %v344_v29 = vpop.permute.xlu0 %343 }
 0x595   :  { %1824 = vmatmul.mubr.msk.f32.vlgmr.msra.gmra.mrb[2].mxu1 %vm214_vm1, %v344_v29  ;;  %v420_v31 = vpop.permute.xlu1 %419 }
 0x596   :  { %1925 = vmatmul.mubr.msk.f32.vlgmr.msra.gmra.mrb[8].mxu0 %vm214_vm1, %v420_v31  ;;  %2029 = vmatpush1.bf16.msra.mxu1 %v2278_v26 }
 0x597   :  { %2031 = vmatprep.subr.bf16.mxu1 %v2280_v27  ;;  %2036 = vmatpush3.bf16.msra.mxu0 %v2338_v6 }
 0x598   :  { %611 = vmatprep.mubr.f32.mxu1 %v2187_v21  ;;  %2037 = vmatprep.subr.bf16.mxu0 %v2188_v2 }
 0x599   :  { %1935 = vmatprep.mubr.msk.f32.mxu0 %vm2189_vm2, %v2187_v21 }
 0x59a   :  { %2033 = vmatpush1.bf16.msra.mxu1 %v2290_v30 }
 0x59b   :  { %2039 = vmatpush3.bf16.msra.mxu0 %v2352_v10  ;;  %2041 = vmatprep.subr.bf16.mxu1 %v2267_v22 }
 0x59c   :  { %2048 = vmatprep.subr.bf16.mxu0 %v2188_v2 }
 0x668   :  { %v413_v33 = vpop.f32.mrb[2].mxu1 }
 0x669   :  { %v493_v34 = vadd.f32 %v413_v33, %v147_v32  ;;  %v415_v35 = vpop.f32.mrb[3].mxu1  ;;  %v489_v37 = vpop.f32.mrb[8].mxu0 }
 0x66a   :  { %v517_v38 = vadd.f32 %v2307_v36, %v415_v35  ;;  %v1926_v39 = vpop.f32.mrb[9].mxu0 }
 0x66b   :  { %v494_v40 = vmul.f32 0.5, %v493_v34 }
 0x66c   :  { %v518_v41 = vadd.f32 %v517_v38, %v489_v37 }
 0x66d   :  { %2133 = vtanh.f32 %v494_v40 }
 0x66e   :  { %v519_v42 = vmul.f32 0.5, %v518_v41 }
 0x670   :  { %2135 = vtanh.f32 %v519_v42 }
 0x677   :  { %v2134_v43 = vpop.eup %2133 }
 0x678   :  { %v496_v44 = vmul.f32 0.5, %v2134_v43 }
 0x67a   :  { %v2136_v45 = vpop.eup %2135  ;;  %v497_v46 = vadd.f32 0.5, %v496_v44 }
 0x67b   :  { %v521_v47 = vmul.f32 0.5, %v2136_v45 }
 0x67c   :  { %v498_v48 = vmul.f32 2.0, %v497_v46  ;;  %v500_v57 = vmul.f32 %v497_v46, %v2315_v60 }
 0x67d   :  { %v522_v49 = vadd.f32 0.5, %v521_v47 }
 0x67e   :  { %v1826_v50 = vadd.f32 -1.0, %v498_v48 }
 0x67f   :  { %v523_v51 = vmul.f32 2.0, %v522_v49  ;;  %v525_v61 = vmul.f32 %v522_v49, %v2317_v62 }
 0x680   :  { %502 = vrot.lane.b32.xlu0 %v1826_v50, %s2185_s1 }
 0x681   :  { %v1827_v52 = vadd.f32 -1.0, %v523_v51 }
 0x683   :  { %527 = vrot.lane.b32.xlu1 %v1827_v52, %s2185_s1 }
 0x6f2   :  { %v503_v53 = vpop.permute.xlu0 %502 }
 0x6f3   :  { %v505_v54 = vmul.f32 %v503_v53, %v497_v46 }
 0x6f5   :  { %507 = vrot.lane.b32.xlu0 %v505_v54, %s2186_s13  ;;  %v528_v55 = vpop.permute.xlu1 %527 }
 0x6f6   :  { %v530_v56 = vmul.f32 %v528_v55, %v522_v49 }
 0x6f8   :  { %532 = vrot.lane.b32.xlu1 %v530_v56, %s2186_s13 }
 0x767   :  { %v508_v58 = vpop.permute.xlu0 %507 }
 0x768   :  { %v510_v59 = vadd.f32 %v508_v58, %v500_v57 }
 0x76a   :  { %2137 = vtanh.f32 %v510_v59  ;;  %v533_v63 = vpop.permute.xlu1 %532 }
 0x76b   :  { %v535_v0 = vadd.f32 %v533_v63, %v525_v61 }
 0x76d   :  { %2139 = vtanh.f32 %v535_v0 }
 0x774   :  { %v2138_v1 = vpop.eup %2137 }
 0x775   :  { %513 = vrot.lane.b32.xlu0 %v2138_v1, %s2185_s1 }
 0x777   :  { %v2140_v4 = vpop.eup %2139 }
 0x778   :  { %538 = vrot.lane.b32.xlu1 %v2140_v4, %s2185_s1 }
 0x7e7   :  { %v514_v5 = vpop.permute.xlu0 %513 }
 0x7e8   :  { %v516_v7 = vmul.f32 %v514_v5, %v497_v46 }
 0x7ea   :  { %543 = vrot.lane.b32.xlu0 %v516_v7, %s2186_s13  ;;  %v539_v8 = vpop.permute.xlu1 %538 }
 0x7eb   :  { %v541_v60 = vmul.f32 %v539_v8, %v522_v49 }
 0x7ed   :  { %619 = vrot.lane.b32.xlu1 %v541_v60, %s2186_s13 }
 0x85c   :  { %v544_v9 = vpop.permute.xlu0 %543 }
 0x85d   :  { %1828 = vmatmul.mubr.msk.f32.vlgmr.msra.gmra.mrb[4].mxu1 %vm214_vm1, %v544_v9 }
 0x85e   :  { %2043 = vmatpush1.bf16.msra.mxu1 %v2278_v26  ;;  %811 = vmatprep.mubr.f32.mxu1 %v2187_v21 }
 0x85f   :  { %v620_v62 = vpop.permute.xlu1 %619  ;;  %2045 = vmatprep.subr.bf16.mxu1 %v2280_v27 }
 0x860   :  { %1936 = vmatmul.mubr.msk.f32.vlgmr.msra.gmra.mrb[10].mxu0 %vm214_vm1, %v620_v62 }
 0x861   :  { %2050 = vmatpush3.bf16.msra.mxu0 %v2338_v6  ;;  %1946 = vmatprep.mubr.msk.f32.mxu0 %vm2189_vm2, %v2187_v21 }
 0x862   :  { %2047 = vmatpush1.bf16.msra.mxu1 %v2290_v30  ;;  %2051 = vmatprep.subr.bf16.mxu0 %v2188_v2 }
 0x863   :  { %2055 = vmatprep.subr.bf16.mxu1 %v2267_v22 }
 0x865   :  { %2053 = vmatpush3.bf16.msra.mxu0 %v2352_v10 }
 0x866   :  { %2062 = vmatprep.subr.bf16.mxu0 %v2188_v2 }
 0x930   :  { %v613_v12 = vpop.f32.mrb[4].mxu1 }
 0x931   :  { %v693_v13 = vadd.f32 %v613_v12, %v152_v11  ;;  %v615_v14 = vpop.f32.mrb[5].mxu1 }
 0x932   :  { %v717_v15 = vadd.f32 %v2307_v36, %v615_v14 }
 0x933   :  { %v694_v16 = vmul.f32 0.5, %v693_v13  ;;  %v689_v17 = vpop.f32.mrb[10].mxu0 }
 0x934   :  { %v718_v18 = vadd.f32 %v717_v15, %v689_v17  ;;  %v1937_v20 = vpop.f32.mrb[11].mxu0 }
 0x935   :  { %2141 = vtanh.f32 %v694_v16 }
 0x936   :  { %v719_v29 = vmul.f32 0.5, %v718_v18 }
 0x938   :  { %2143 = vtanh.f32 %v719_v29 }
 0x93f   :  { %v2142_v31 = vpop.eup %2141 }
 0x940   :  { %v696_v32 = vmul.f32 0.5, %v2142_v31 }
 0x942   :  { %v2144_v33 = vpop.eup %2143  ;;  %v697_v34 = vadd.f32 0.5, %v696_v32 }
 0x943   :  { %v721_v35 = vmul.f32 0.5, %v2144_v33 }
 0x944   :  { %v698_v37 = vmul.f32 2.0, %v697_v34  ;;  %v700_v45 = vmul.f32 %v697_v34, %v510_v59  ;;  %v157_v59 = vadd.f32 %v2249_v3, %v2376_v24 }
 0x945   :  { %v722_v38 = vadd.f32 0.5, %v721_v35 }
 0x946   :  { %v1830_v19 = vadd.f32 -1.0, %v698_v37 }
 0x947   :  { %v723_v39 = vmul.f32 2.0, %v722_v38  ;;  %v725_v48 = vmul.f32 %v722_v38, %v535_v0 }
 0x948   :  { %702 = vrot.lane.b32.xlu0 %v1830_v19, %s2185_s1 }
 0x949   :  { %v1831_v40 = vadd.f32 -1.0, %v723_v39 }
 0x94b   :  { %727 = vrot.lane.b32.xlu1 %v1831_v40, %s2185_s1 }
 0x9ba   :  { %v703_v41 = vpop.permute.xlu0 %702 }
 0x9bb   :  { %v705_v42 = vmul.f32 %v703_v41, %v697_v34 }
 0x9bd   :  { %707 = vrot.lane.b32.xlu0 %v705_v42, %s2186_s13  ;;  %v728_v43 = vpop.permute.xlu1 %727 }
 0x9be   :  { %v730_v44 = vmul.f32 %v728_v43, %v722_v38 }
 0x9c0   :  { %732 = vrot.lane.b32.xlu1 %v730_v44, %s2186_s13 }
 0xa2f   :  { %v708_v46 = vpop.permute.xlu0 %707 }
 0xa30   :  { %v710_v47 = vadd.f32 %v708_v46, %v700_v45  ;;  %v162_v46 = vadd.f32 %v2374_v23, %v2249_v3 }
 0xa32   :  { %2145 = vtanh.f32 %v710_v47  ;;  %v733_v49 = vpop.permute.xlu1 %732 }
 0xa33   :  { %v735_v50 = vadd.f32 %v733_v49, %v725_v48 }
 0xa35   :  { %2147 = vtanh.f32 %v735_v50 }
 0xa3c   :  { %v2146_v51 = vpop.eup %2145 }
 0xa3d   :  { %713 = vrot.lane.b32.xlu0 %v2146_v51, %s2185_s1 }
 0xa3f   :  { %v2148_v52 = vpop.eup %2147 }
 0xa40   :  { %738 = vrot.lane.b32.xlu1 %v2148_v52, %s2185_s1 }
 0xaaf   :  { %v714_v53 = vpop.permute.xlu0 %713 }
 0xab0   :  { %v716_v54 = vmul.f32 %v714_v53, %v697_v34 }
 0xab2   :  { %743 = vrot.lane.b32.xlu0 %v716_v54, %s2186_s13  ;;  %v739_v55 = vpop.permute.xlu1 %738 }
 0xab3   :  { %v741_v56 = vmul.f32 %v739_v55, %v722_v38 }
 0xab5   :  { %819 = vrot.lane.b32.xlu1 %v741_v56, %s2186_s13 }
 0xb24   :  { %v744_v57 = vpop.permute.xlu0 %743 }
 0xb25   :  { %1832 = vmatmul.mubr.msk.f32.vlgmr.msra.gmra.mrb[6].mxu1 %vm214_vm1, %v744_v57 }
 0xb26   :  { %2057 = vmatpush1.bf16.msra.mxu1 %v2278_v26  ;;  %1011 = vmatprep.mubr.f32.mxu1 %v2187_v21 }
 0xb27   :  { %v820_v58 = vpop.permute.xlu1 %819  ;;  %2059 = vmatprep.subr.bf16.mxu1 %v2280_v27 }
 0xb28   :  { %1947 = vmatmul.mubr.msk.f32.vlgmr.msra.gmra.mrb[12].mxu0 %vm214_vm1, %v820_v58 }
 0xb29   :  { %2064 = vmatpush3.bf16.msra.mxu0 %v2338_v6  ;;  %1957 = vmatprep.mubr.msk.f32.mxu0 %vm2189_vm2, %v2187_v21 }
 0xb2a   :  { %2061 = vmatpush1.bf16.msra.mxu1 %v2290_v30  ;;  %2065 = vmatprep.subr.bf16.mxu0 %v2188_v2 }
 0xb2b   :  { %2069 = vmatprep.subr.bf16.mxu1 %v2267_v22 }
 0xb2d   :  { %2067 = vmatpush3.bf16.msra.mxu0 %v2352_v10 }
 0xb2e   :  { %2076 = vmatprep.subr.bf16.mxu0 %v2188_v2 }
 0xbf8   :  { %v813_v61 = vpop.f32.mrb[6].mxu1 }
 0xbf9   :  { %v893_v63 = vadd.f32 %v813_v61, %v157_v59  ;;  %v815_v0 = vpop.f32.mrb[7].mxu1 }
 0xbfa   :  { %v917_v1 = vadd.f32 %v2307_v36, %v815_v0 }
 0xbfb   :  { %v894_v4 = vmul.f32 0.5, %v893_v63  ;;  %v889_v5 = vpop.f32.mrb[12].mxu0 }
 0xbfc   :  { %v918_v7 = vadd.f32 %v917_v1, %v889_v5  ;;  %v1948_v8 = vpop.f32.mrb[13].mxu0 }
 0xbfd   :  { %2149 = vtanh.f32 %v894_v4 }
 0xbfe   :  { %v919_v60 = vmul.f32 0.5, %v918_v7 }
 0xc00   :  { %2151 = vtanh.f32 %v919_v60 }
 0xc07   :  { %v2150_v9 = vpop.eup %2149 }
 0xc08   :  { %v896_v62 = vmul.f32 0.5, %v2150_v9 }
 0xc0a   :  { %v2152_v11 = vpop.eup %2151  ;;  %v897_v12 = vadd.f32 0.5, %v896_v62 }
 0xc0b   :  { %v921_v13 = vmul.f32 0.5, %v2152_v11 }
 0xc0c   :  { %v898_v14 = vmul.f32 2.0, %v897_v12  ;;  %v900_v32 = vmul.f32 %v897_v12, %v710_v47 }
 0xc0d   :  { %v922_v15 = vadd.f32 0.5, %v921_v13 }
 0xc0e   :  { %v1834_v24 = vadd.f32 -1.0, %v898_v14 }
 0xc0f   :  { %v923_v16 = vmul.f32 2.0, %v922_v15  ;;  %v925_v35 = vmul.f32 %v922_v15, %v735_v50 }
 0xc10   :  { %902 = vrot.lane.b32.xlu0 %v1834_v24, %s2185_s1 }
 0xc11   :  { %v1835_v17 = vadd.f32 -1.0, %v923_v16 }
 0xc13   :  { %927 = vrot.lane.b32.xlu1 %v1835_v17, %s2185_s1 }
 0xc82   :  { %v903_v18 = vpop.permute.xlu0 %902 }
 0xc83   :  { %v905_v20 = vmul.f32 %v903_v18, %v897_v12 }
 0xc85   :  { %907 = vrot.lane.b32.xlu0 %v905_v20, %s2186_s13  ;;  %v928_v29 = vpop.permute.xlu1 %927 }
 0xc86   :  { %v930_v31 = vmul.f32 %v928_v29, %v922_v15 }
 0xc88   :  { %932 = vrot.lane.b32.xlu1 %v930_v31, %s2186_s13 }
 0xcf7   :  { %v908_v33 = vpop.permute.xlu0 %907 }
 0xcf8   :  { %v910_v34 = vadd.f32 %v908_v33, %v900_v32  ;;  %v167_v32 = vadd.f32 %v2249_v3, %v2380_v28 }
 0xcfa   :  { %2153 = vtanh.f32 %v910_v34  ;;  %v933_v37 = vpop.permute.xlu1 %932 }
 0xcfb   :  { %v935_v38 = vadd.f32 %v933_v37, %v925_v35 }
 0xcfd   :  { %2155 = vtanh.f32 %v935_v38 }
 0xd04   :  { %v2154_v19 = vpop.eup %2153 }
 0xd05   :  { %913 = vrot.lane.b32.xlu0 %v2154_v19, %s2185_s1 }
 0xd07   :  { %v2156_v39 = vpop.eup %2155 }
 0xd08   :  { %938 = vrot.lane.b32.xlu1 %v2156_v39, %s2185_s1 }
 0xd77   :  { %v914_v40 = vpop.permute.xlu0 %913 }
 0xd78   :  { %v916_v41 = vmul.f32 %v914_v40, %v897_v12 }
 0xd7a   :  { %943 = vrot.lane.b32.xlu0 %v916_v41, %s2186_s13  ;;  %v939_v42 = vpop.permute.xlu1 %938 }
 0xd7b   :  { %v941_v43 = vmul.f32 %v939_v42, %v922_v15 }
 0xd7d   :  { %1019 = vrot.lane.b32.xlu1 %v941_v43, %s2186_s13 }
 0xdec   :  { %v944_v44 = vpop.permute.xlu0 %943 }
 0xded   :  { %1836 = vmatmul.mubr.msk.f32.vlgmr.msra.gmra.mrb[8].mxu1 %vm214_vm1, %v944_v44 }
 0xdee   :  { %2071 = vmatpush1.bf16.msra.mxu1 %v2278_v26  ;;  %1211 = vmatprep.mubr.f32.mxu1 %v2187_v21 }
 0xdef   :  { %v1020_v45 = vpop.permute.xlu1 %1019  ;;  %2073 = vmatprep.subr.bf16.mxu1 %v2280_v27 }
 0xdf0   :  { %1958 = vmatmul.mubr.msk.f32.vlgmr.msra.gmra.mrb[14].mxu0 %vm214_vm1, %v1020_v45 }
 0xdf1   :  { %2078 = vmatpush3.bf16.msra.mxu0 %v2338_v6  ;;  %1968 = vmatprep.mubr.msk.f32.mxu0 %vm2189_vm2, %v2187_v21 }
 0xdf2   :  { %2075 = vmatpush1.bf16.msra.mxu1 %v2290_v30  ;;  %2079 = vmatprep.subr.bf16.mxu0 %v2188_v2 }
 0xdf3   :  { %2083 = vmatprep.subr.bf16.mxu1 %v2267_v22 }
 0xdf5   :  { %2081 = vmatpush3.bf16.msra.mxu0 %v2352_v10 }
 0xdf6   :  { %2090 = vmatprep.subr.bf16.mxu0 %v2188_v2 }
 0xec0   :  { %v1013_v47 = vpop.f32.mrb[8].mxu1 }
 0xec1   :  { %v1093_v48 = vadd.f32 %v1013_v47, %v162_v46  ;;  %v1015_v49 = vpop.f32.mrb[9].mxu1 }
 0xec2   :  { %v1117_v50 = vadd.f32 %v2307_v36, %v1015_v49 }
 0xec3   :  { %v1094_v51 = vmul.f32 0.5, %v1093_v48  ;;  %v1089_v52 = vpop.f32.mrb[14].mxu0 }
 0xec4   :  { %v1118_v53 = vadd.f32 %v1117_v50, %v1089_v52  ;;  %v1959_v54 = vpop.f32.mrb[15].mxu0 }
 0xec5   :  { %2157 = vtanh.f32 %v1094_v51 }
 0xec6   :  { %v1119_v55 = vmul.f32 0.5, %v1118_v53 }
 0xec8   :  { %2159 = vtanh.f32 %v1119_v55 }
 0xecf   :  { %v2158_v56 = vpop.eup %2157 }
 0xed0   :  { %v1096_v57 = vmul.f32 0.5, %v2158_v56 }
 0xed2   :  { %v2160_v58 = vpop.eup %2159  ;;  %v1097_v59 = vadd.f32 0.5, %v1096_v57 }
 0xed3   :  { %v1121_v61 = vmul.f32 0.5, %v2160_v58 }
 0xed4   :  { %v1098_v63 = vmul.f32 2.0, %v1097_v59  ;;  %v1100_v9 = vmul.f32 %v1097_v59, %v910_v34 }
 0xed5   :  { %v1122_v0 = vadd.f32 0.5, %v1121_v61 }
 0xed6   :  { %v1838_v23 = vadd.f32 -1.0, %v1098_v63 }
 0xed7   :  { %v1123_v1 = vmul.f32 2.0, %v1122_v0  ;;  %v1125_v12 = vmul.f32 %v1122_v0, %v935_v38 }
 0xed8   :  { %1102 = vrot.lane.b32.xlu0 %v1838_v23, %s2185_s1 }
 0xed9   :  { %v1839_v4 = vadd.f32 -1.0, %v1123_v1 }
 0xedb   :  { %1127 = vrot.lane.b32.xlu1 %v1839_v4, %s2185_s1 }
 0xf4a   :  { %v1103_v5 = vpop.permute.xlu0 %1102 }
 0xf4b   :  { %v1105_v7 = vmul.f32 %v1103_v5, %v1097_v59 }
 0xf4d   :  { %1107 = vrot.lane.b32.xlu0 %v1105_v7, %s2186_s13  ;;  %v1128_v8 = vpop.permute.xlu1 %1127 }
 0xf4e   :  { %v1130_v60 = vmul.f32 %v1128_v8, %v1122_v0 }
 0xf50   :  { %1132 = vrot.lane.b32.xlu1 %v1130_v60, %s2186_s13 }
 0xfbf   :  { %v1108_v62 = vpop.permute.xlu0 %1107 }
 0xfc0   :  { %v1110_v11 = vadd.f32 %v1108_v62, %v1100_v9 }
 0xfc2   :  { %2161 = vtanh.f32 %v1110_v11  ;;  %v1133_v13 = vpop.permute.xlu1 %1132 }
 0xfc3   :  { %v1135_v14 = vadd.f32 %v1133_v13, %v1125_v12 }
 0xfc5   :  { %2163 = vtanh.f32 %v1135_v14 }
 0xfcc   :  { %v2162_v15 = vpop.eup %2161 }
 0xfcd   :  { %1113 = vrot.lane.b32.xlu0 %v2162_v15, %s2185_s1 }
 0xfcf   :  { %v2164_v24 = vpop.eup %2163 }
 0xfd0   :  { %1138 = vrot.lane.b32.xlu1 %v2164_v24, %s2185_s1 }
0x103f   :  { %v1114_v16 = vpop.permute.xlu0 %1113 }
0x1040   :  { %v1116_v17 = vmul.f32 %v1114_v16, %v1097_v59 }
0x1042   :  { %1143 = vrot.lane.b32.xlu0 %v1116_v17, %s2186_s13  ;;  %v1139_v18 = vpop.permute.xlu1 %1138 }
0x1043   :  { %v1141_v20 = vmul.f32 %v1139_v18, %v1122_v0 }
0x1045   :  { %1219 = vrot.lane.b32.xlu1 %v1141_v20, %s2186_s13 }
0x10b4   :  { %v1144_v29 = vpop.permute.xlu0 %1143 }
0x10b5   :  { %1840 = vmatmul.mubr.msk.f32.vlgmr.msra.gmra.mrb[10].mxu1 %vm214_vm1, %v1144_v29 }
0x10b6   :  { %2085 = vmatpush1.bf16.msra.mxu1 %v2278_v26  ;;  %1411 = vmatprep.mubr.f32.mxu1 %v2187_v21 }
0x10b7   :  { %v1220_v31 = vpop.permute.xlu1 %1219  ;;  %2087 = vmatprep.subr.bf16.mxu1 %v2280_v27 }
0x10b8   :  { %1969 = vmatmul.mubr.msk.f32.vlgmr.msra.gmra.mrb[16].mxu0 %vm214_vm1, %v1220_v31 }
0x10b9   :  { %2092 = vmatpush3.bf16.msra.mxu0 %v2338_v6  ;;  %1979 = vmatprep.mubr.msk.f32.mxu0 %vm2189_vm2, %v2187_v21 }
0x10ba   :  { %2089 = vmatpush1.bf16.msra.mxu1 %v2290_v30  ;;  %2093 = vmatprep.subr.bf16.mxu0 %v2188_v2 }
0x10bb   :  { %2097 = vmatprep.subr.bf16.mxu1 %v2267_v22 }
0x10bd   :  { %2095 = vmatpush3.bf16.msra.mxu0 %v2352_v10 }
0x10be   :  { %2104 = vmatprep.subr.bf16.mxu0 %v2188_v2 }
0x1188   :  { %v1213_v33 = vpop.f32.mrb[10].mxu1 }
0x1189   :  { %v1293_v34 = vadd.f32 %v1213_v33, %v167_v32  ;;  %v1215_v35 = vpop.f32.mrb[11].mxu1 }
0x118a   :  { %v1317_v37 = vadd.f32 %v2307_v36, %v1215_v35 }
0x118b   :  { %v1294_v38 = vmul.f32 0.5, %v1293_v34  ;;  %v1289_v19 = vpop.f32.mrb[16].mxu0 }
0x118c   :  { %v1318_v39 = vadd.f32 %v1317_v37, %v1289_v19  ;;  %v1970_v40 = vpop.f32.mrb[17].mxu0 }
0x118d   :  { %2165 = vtanh.f32 %v1294_v38 }
0x118e   :  { %v1319_v41 = vmul.f32 0.5, %v1318_v39 }
0x1190   :  { %2167 = vtanh.f32 %v1319_v41 }
0x1197   :  { %v2166_v22 = vpop.eup %2165 }
0x1198   :  { %v1296_v42 = vmul.f32 0.5, %v2166_v22 }
0x119a   :  { %v2168_v43 = vpop.eup %2167  ;;  %v1297_v44 = vadd.f32 0.5, %v1296_v42 }
0x119b   :  { %v1321_v45 = vmul.f32 0.5, %v2168_v43 }
0x119c   :  { %v1298_v46 = vmul.f32 2.0, %v1297_v44  ;;  %v1300_v54 = vmul.f32 %v1297_v44, %v1110_v11 }
0x119d   :  { %v1322_v47 = vadd.f32 0.5, %v1321_v45 }
0x119e   :  { %v1842_v28 = vadd.f32 -1.0, %v1298_v46 }
0x119f   :  { %v1323_v48 = vmul.f32 2.0, %v1322_v47  ;;  %v1325_v57 = vmul.f32 %v1322_v47, %v1135_v14 }
0x11a0   :  { %1302 = vrot.lane.b32.xlu0 %v1842_v28, %s2185_s1 }
0x11a1   :  { %v1843_v49 = vadd.f32 -1.0, %v1323_v48 }
0x11a3   :  { %1327 = vrot.lane.b32.xlu1 %v1843_v49, %s2185_s1 }
0x1212   :  { %v1303_v50 = vpop.permute.xlu0 %1302 }
0x1213   :  { %v1305_v51 = vmul.f32 %v1303_v50, %v1297_v44 }
0x1215   :  { %1307 = vrot.lane.b32.xlu0 %v1305_v51, %s2186_s13  ;;  %v1328_v52 = vpop.permute.xlu1 %1327 }
0x1216   :  { %v1330_v53 = vmul.f32 %v1328_v52, %v1322_v47 }
0x1218   :  { %1332 = vrot.lane.b32.xlu1 %v1330_v53, %s2186_s13 }
0x1287   :  { %v1308_v55 = vpop.permute.xlu0 %1307 }
0x1288   :  { %v1310_v56 = vadd.f32 %v1308_v55, %v1300_v54 }
0x128a   :  { %2169 = vtanh.f32 %v1310_v56  ;;  %v1333_v58 = vpop.permute.xlu1 %1332 }
0x128b   :  { %v1335_v59 = vadd.f32 %v1333_v58, %v1325_v57 }
0x128d   :  { %2171 = vtanh.f32 %v1335_v59 }
0x1294   :  { %v2170_v61 = vpop.eup %2169 }
0x1295   :  { %1313 = vrot.lane.b32.xlu0 %v2170_v61, %s2185_s1 }
0x1297   :  { %v2172_v63 = vpop.eup %2171 }
0x1298   :  { %1338 = vrot.lane.b32.xlu1 %v2172_v63, %s2185_s1  ;;  %v1719_v63 = vld [vmem:[%s2561_s6 + $0x8] sm:$0xff] }
0x1307   :  { %v1314_v0 = vpop.permute.xlu0 %1313 }
0x1308   :  { %v1316_v23 = vmul.f32 %v1314_v0, %v1297_v44  ;;  %v1720_v0 = vld [vmem:[%s2561_s6 + $0x10] sm:$0xff] }
0x130a   :  { %1343 = vrot.lane.b32.xlu0 %v1316_v23, %s2186_s13  ;;  %v1339_v1 = vpop.permute.xlu1 %1338 }
0x130b   :  { %v1341_v4 = vmul.f32 %v1339_v1, %v1322_v47  ;;  %v1721_v1 = vld [vmem:[%s2561_s6 + $0x18] sm:$0xff] }
0x130d   :  { %1419 = vrot.lane.b32.xlu1 %v1341_v4, %s2186_s13  ;;  %v2114_v4 = vpack.c.bf16 %v1721_v1, %v1720_v0 }
0x137c   :  { %v1344_v5 = vpop.permute.xlu0 %1343 }
0x137d   :  { %1844 = vmatmul.mubr.msk.f32.vlgmr.msra.gmra.mrb[12].mxu1 %vm214_vm1, %v1344_v5 }
0x137e   :  { %2099 = vmatpush1.bf16.msra.mxu1 %v2278_v26  ;;  %1611 = vmatprep.mubr.f32.mxu1 %v2187_v21  ;;  %v172_v26 = vadd.f32 %v2378_v25, %v2249_v3 }
0x137f   :  { %v1420_v7 = vpop.permute.xlu1 %1419  ;;  %2101 = vmatprep.subr.bf16.mxu1 %v2280_v27 }
0x1380   :  { %1980 = vmatmul.mubr.msk.f32.vlgmr.msra.gmra.mrb[18].mxu0 %vm214_vm1, %v1420_v7 }
0x1381   :  { %2106 = vmatpush3.bf16.msra.mxu0 %v2338_v6  ;;  %1990 = vmatprep.mubr.msk.f32.mxu0 %vm2189_vm2, %v2187_v21 }
0x1382   :  { %2103 = vmatpush1.bf16.msra.mxu1 %v2290_v30  ;;  %2107 = vmatprep.subr.bf16.mxu0 %v2188_v2 }
0x1383   :  { %2110 = vmatprep.subr.bf16.mxu1 %v2188_v2 }
0x1385   :  { %2109 = vmatpush3.bf16.msra.mxu0 %v2352_v10 }
0x1450   :  { %v1413_v8 = vpop.f32.mrb[12].mxu1 }
0x1451   :  { %v1493_v27 = vadd.f32 %v1413_v8, %v172_v26  ;;  %v1415_v60 = vpop.f32.mrb[13].mxu1 }
0x1452   :  { %v1517_v9 = vadd.f32 %v2307_v36, %v1415_v60  ;;  %v1851_v60 = vld [vmem:[%s2562_s7] ss:$0 sm:$0xff] }
0x1453   :  { %v1494_v6 = vmul.f32 0.5, %v1493_v27  ;;  %v1489_v62 = vpop.f32.mrb[18].mxu0 }
0x1454   :  { %v1518_v11 = vadd.f32 %v1517_v9, %v1489_v62  ;;  %v1981_v12 = vpop.f32.mrb[19].mxu0 }
0x1455   :  { %2173 = vtanh.f32 %v1494_v6 }
0x1456   :  { %v1519_v30 = vmul.f32 0.5, %v1518_v11 }
0x1458   :  { %2175 = vtanh.f32 %v1519_v30 }
0x145f   :  { %v2174_v13 = vpop.eup %2173 }
0x1460   :  { %v1496_v14 = vmul.f32 0.5, %v2174_v13 }
0x1462   :  { %v2176_v15 = vpop.eup %2175  ;;  %v1497_v24 = vadd.f32 0.5, %v1496_v14 }
0x1463   :  { %v1521_v10 = vmul.f32 0.5, %v2176_v15 }
0x1464   :  { %v1498_v16 = vmul.f32 2.0, %v1497_v24  ;;  %v1500_v33 = vmul.f32 %v1497_v24, %v1310_v56 }
0x1465   :  { %v1522_v17 = vadd.f32 0.5, %v1521_v10 }
0x1466   :  { %v1846_v3 = vadd.f32 -1.0, %v1498_v16 }
0x1467   :  { %v1523_v25 = vmul.f32 2.0, %v1522_v17  ;;  %v1525_v37 = vmul.f32 %v1522_v17, %v1335_v59 }
0x1468   :  { %1502 = vrot.lane.b32.xlu0 %v1846_v3, %s2185_s1 }
0x1469   :  { %v1847_v18 = vadd.f32 -1.0, %v1523_v25 }
0x146b   :  { %1527 = vrot.lane.b32.xlu1 %v1847_v18, %s2185_s1 }
0x14da   :  { %v1503_v20 = vpop.permute.xlu0 %1502 }
0x14db   :  { %v1505_v29 = vmul.f32 %v1503_v20, %v1497_v24 }
0x14dd   :  { %1507 = vrot.lane.b32.xlu0 %v1505_v29, %s2186_s13  ;;  %v1528_v31 = vpop.permute.xlu1 %1527 }
0x14de   :  { %v1530_v32 = vmul.f32 %v1528_v31, %v1522_v17 }
0x14e0   :  { %1532 = vrot.lane.b32.xlu1 %v1530_v32, %s2186_s13 }
0x154f   :  { %v1508_v34 = vpop.permute.xlu0 %1507 }
0x1550   :  { %v1510_v35 = vadd.f32 %v1508_v34, %v1500_v33 }
0x1552   :  { %2177 = vtanh.f32 %v1510_v35  ;;  %v1533_v38 = vpop.permute.xlu1 %1532 }
0x1553   :  { %v1535_v19 = vadd.f32 %v1533_v38, %v1525_v37 }
0x1555   :  { %2179 = vtanh.f32 %v1535_v19 }
0x155c   :  { %v2178_v39 = vpop.eup %2177 }
0x155d   :  { %1513 = vrot.lane.b32.xlu0 %v2178_v39, %s2185_s1 }
0x155f   :  { %v2180_v40 = vpop.eup %2179 }
0x1560   :  { %1538 = vrot.lane.b32.xlu1 %v2180_v40, %s2185_s1 }
0x15cf   :  { %v1514_v41 = vpop.permute.xlu0 %1513 }
0x15d0   :  { %v1516_v22 = vmul.f32 %v1514_v41, %v1497_v24 }
0x15d2   :  { %1543 = vrot.lane.b32.xlu0 %v1516_v22, %s2186_s13  ;;  %v1539_v42 = vpop.permute.xlu1 %1538 }
0x15d3   :  { %v1541_v43 = vmul.f32 %v1539_v42, %v1522_v17 }
0x15d5   :  { %1618 = vrot.lane.b32.xlu1 %v1541_v43, %s2186_s13 }
0x1644   :  { %v1544_v44 = vpop.permute.xlu0 %1543 }
0x1645   :  { %1848 = vmatmul.mubr.msk.f32.vlgmr.msra.gmra.mrb[14].mxu1 %vm214_vm1, %v1544_v44 }
0x1646   :  { %2001 = vmatprep.mubr.msk.f32.mxu1 %vm2189_vm2, %v2187_v21 }
0x1647   :  { %v1619_v45 = vpop.permute.xlu1 %1618 }
0x1648   :  { %1991 = vmatmul.mubr.msk.f32.vlgmr.msra.gmra.mrb[20].mxu0 %vm214_vm1, %v1619_v45 }
0x1718   :  { %v1613_v46 = vpop.f32.mrb[14].mxu1 }
0x1719   :  { %v1614_v47 = vpop.f32.mrb[15].mxu1 }
0x171a   :  { %v1692_v28 = vadd.f32 %v2307_v36, %v1614_v47  ;;  %v1718_v36 = vld [vmem:[%s2561_s6] sm:$0xff] }
0x171b   :  { %v1688_v48 = vpop.f32.mrb[20].mxu0  ;;  %v2111_v23 = vpack.c.bf16 %v1719_v63, %v1718_v36 }
0x171c   :  { %v1693_v49 = vadd.f32 %v1692_v28, %v1688_v48  ;;  %v1992_v50 = vpop.f32.mrb[21].mxu0 }
0x171d   :  { %2112 = vmatpush3.bf16.msra.mxu1 %v2111_v23 }
0x171e   :  { %v1694_v51 = vmul.f32 0.5, %v1693_v49  ;;  %2113 = vmatprep.subr.bf16.mxu1 %v2188_v2 }
0x1720   :  { %2181 = vtanh.f32 %v1694_v51 }
0x1721   :  { %2115 = vmatpush3.bf16.msra.mxu1 %v2114_v4 }
0x172a   :  { %v2182_v52 = vpop.eup %2181 }
0x172b   :  { %v1696_v53 = vmul.f32 0.5, %v2182_v52 }
0x172d   :  { %v1697_v54 = vadd.f32 0.5, %v1696_v53 }
0x172f   :  { %v1698_v55 = vmul.f32 2.0, %v1697_v54  ;;  %v1700_v58 = vmul.f32 %v1697_v54, %v1535_v19 }
0x1731   :  { %v1850_v56 = vadd.f32 -1.0, %v1698_v55 }
0x1733   :  { %1702 = vrot.lane.b32.xlu0 %v1850_v56, %s2185_s1 }
0x17a5   :  { %v1703_v21 = vpop.permute.xlu0 %1702 }
0x17a6   :  { %v1705_v57 = vmul.f32 %v1703_v21, %v1697_v54 }
0x17a8   :  { %1707 = vrot.lane.b32.xlu1 %v1705_v57, %s2186_s13 }
0x181a   :  { %v1708_v59 = vpop.permute.xlu1 %1707 }
0x181b   :  { %v1710_v61 = vadd.f32 %v1708_v59, %v1700_v58 }
0x181d   :  { %2183 = vtanh.f32 %v1710_v61 }
0x1827   :  { %v2184_v5 = vpop.eup %2183 }
0x1828   :  { %1713 = vrot.lane.b32.xlu0 %v2184_v5, %s2185_s1 }
0x189a   :  { %v1714_v7 = vpop.permute.xlu0 %1713 }
0x189b   :  { %v1716_v26 = vmul.f32 %v1714_v7, %v1697_v54 }
0x189d   :  { %v1717_v8 = vmax.f32 %v1716_v26, 0.0 }
0x189f   :  { %1730 = vrot.lane.b32.xlu1 %v1717_v8, %s2186_s13 }
0x1911   :  { %v1731_v27 = vpop.permute.xlu1 %1730 }
0x1912   :  { %2002 = vmatmul.mubr.msk.f32.vlgmr.msra.gmra.mrb[16].mxu1 %vm214_vm1, %v1731_v27 }
0x19e5   :  { %v1800_v9 = vpop.f32.mrb[16].mxu1 }
0x19e6   :  { %v1801_v6 = vadd.f32 %v1851_v60, %v1800_v9  ;;  %v2003_v2 = vpop.f32.mrb[17].mxu1 }
0x19e8   :  { %1805 = vst.msk [vmem:[%s2563_s8] sm:$0xff] %vm1804_vm3, %v1801_v6 }

</bundles_post_ra>
